<compile_context>
chip_gen: v7x
topology: tpu7x:2x2x1
jax: 0.10.0
libtpu: 0.0.40
codegen_flags: <defaults>
</compile_context>

<pallas_src>
import functools

import jax
import jax.numpy as jnp
from jax.experimental import pallas as pl
from jax.experimental.pallas import tpu as pltpu


def _attention_kernel(x_ref, wqkv_ref, bqkv_ref, wo_ref, bo_ref, o_ref,
                      *, n_heads, d_k):
    """One batch element per grid step.

    x_ref    : (1, C, S)     NCHW-flattened activations (S = H*W on lane axis)
    wqkv_ref : (3*HD, C) bf16  fused q/k/v weight rows [q | k | v], q pre-scaled
    bqkv_ref : (3*HD, 1) f32   fused q/k/v bias, q part pre-scaled
    wo_ref   : (C, HD) bf16    output Linear weight (PyTorch layout)
    bo_ref   : (C, 1) f32      output Linear bias
    o_ref    : (1, C, S)       output, same layout as input
    """
    HD = n_heads * d_k
    x_bf = x_ref[0].astype(jnp.bfloat16)                      # (C, S) MXU operand

    # Fused q/k/v projection: single (3HD, C) @ (C, S) matmul, f32 accumulation.
    qkvT = jnp.dot(wqkv_ref[...], x_bf,
                   preferred_element_type=jnp.float32) + bqkv_ref[...]  # (3HD, S)

    out_acc = None
    for h in range(n_heads):                                  # static, small loop
        qh = qkvT[h * d_k:(h + 1) * d_k].astype(jnp.bfloat16)             # (dk, S)
        kh = qkvT[HD + h * d_k:HD + (h + 1) * d_k].astype(jnp.bfloat16)   # (dk, S)
        vh = qkvT[2 * HD + h * d_k:2 * HD + (h + 1) * d_k].astype(jnp.bfloat16)

        # Transposed logits sT[j, i] = k_j . q_i (q already carries the scale).
        sT = jax.lax.dot_general(
            kh, qh, (((0,), (0,)), ((), ())),
            preferred_element_type=jnp.float32)                # (S_j, S_i)

        # Unnormalized softmax over j (axis 0); keep max/sum in f32.
        m = jnp.max(sT, axis=0, keepdims=True)                 # (1, S_i)
        p = jnp.exp(sT - m)                                    # (S, S) f32
        l = jnp.sum(p, axis=0, keepdims=True)                  # (1, S_i)
        p_bf = p.astype(jnp.bfloat16)                          # single (S,S) f32 live

        # PV: rh[d, i] = sum_j vh[d, j] * p[j, i]  — native matmul, no transpose.
        rh = jnp.dot(vh, p_bf, preferred_element_type=jnp.float32)        # (dk, S)
        # Deferred normalization on the small (dk, S) result (EUP reciprocal).
        rh = rh * pl.reciprocal(l, approx=True)

        # Per-head output-projection accumulation (avoids concat relayout).
        woh = wo_ref[:, h * d_k:(h + 1) * d_k]                 # (C, dk) bf16
        contrib = jnp.dot(woh, rh.astype(jnp.bfloat16),
                          preferred_element_type=jnp.float32)  # (C, S)
        out_acc = contrib if out_acc is None else out_acc + contrib

    # Bias + residual (re-read x here to bound live ranges); lane-dense store.
    o_ref[0] = (out_acc + bo_ref[...]
                + x_ref[0].astype(jnp.float32)).astype(o_ref.dtype)


def attention_block_forward(x, proj_w, proj_b, out_w, out_b,
                            *, n_heads=1, d_k=None, t=None):
    """Equivalent of AttentionBlock.forward(x, t); t is ignored.

    x      : (B, C, H, W) float32
    proj_w : (3*n_heads*d_k, C)   nn.Linear(C, 3*n_heads*d_k).weight
    proj_b : (3*n_heads*d_k,)     its bias
    out_w  : (C, n_heads*d_k)     nn.Linear(n_heads*d_k, C).weight
    out_b  : (C,)                 its bias
    """
    del t
    B, C, H, W = x.shape
    if d_k is None:
        d_k = C
    S = H * W
    HD = n_heads * d_k
    scale = float(d_k) ** -0.5

    # NCHW-flattened activations: no transpose, no padding (metadata-only).
    x_flat = x.reshape(B, C, S)

    # Weight prep (done once, weight-side):
    #  - reorder fused qkv rows from per-head [q|k|v] interleave into
    #    contiguous [all-q | all-k | all-v] blocks for simple kernel slicing,
    #  - fold the attention scale into the q rows (weight + bias),
    #  - cast weights to bf16 once; biases stay f32 (added post-accumulation).
    w3 = proj_w.reshape(n_heads, 3, d_k, C)
    b3 = proj_b.reshape(n_heads, 3, d_k)
    wq = (w3[:, 0] * scale).reshape(HD, C)
    wk = w3[:, 1].reshape(HD, C)
    wv = w3[:, 2].reshape(HD, C)
    bq = (b3[:, 0] * scale).reshape(HD)
    bk = b3[:, 1].reshape(HD)
    bv = b3[:, 2].reshape(HD)
    wqkv = jnp.concatenate([wq, wk, wv], axis=0).astype(jnp.bfloat16)      # (3HD, C)
    bqkv = jnp.concatenate([bq, bk, bv], axis=0).reshape(3 * HD, 1).astype(jnp.float32)
    wo = out_w.astype(jnp.bfloat16)                                        # (C, HD)
    bo = out_b.reshape(C, 1).astype(jnp.float32)

    def _rep(shape):
        # resident (replicated) operand: same block for every grid step
        nd = len(shape)
        return pl.BlockSpec(shape, lambda b: (0,) * nd)

    kernel = functools.partial(_attention_kernel, n_heads=n_heads, d_k=d_k)

    out_flat = pl.pallas_call(
        kernel,
        out_shape=jax.ShapeDtypeStruct((B, C, S), x.dtype),
        grid_spec=pltpu.PrefetchScalarGridSpec(
            num_scalar_prefetch=0,
            grid=(B,),
            in_specs=[
                pl.BlockSpec((1, C, S), lambda b: (b, 0, 0)),
                _rep((3 * HD, C)),
                _rep((3 * HD, 1)),
                _rep((C, HD)),
                _rep((C, 1)),
            ],
            out_specs=pl.BlockSpec((1, C, S), lambda b: (b, 0, 0)),
        ),
        compiler_params=pltpu.CompilerParams(
            dimension_semantics=("parallel",)),
    )(x_flat, wqkv, bqkv, wo, bo)

    return out_flat.reshape(B, C, H, W)


def _reference_attention(x, proj_w, proj_b, out_w, out_b, n_heads, d_k):
    """Pure-JAX f32 reference matching the PyTorch AttentionBlock.forward."""
    B, C, H, W = x.shape
    S = H * W
    xs = x.reshape(B, C, S).transpose(0, 2, 1)                 # (B, S, C)
    qkv = xs @ proj_w.T + proj_b                               # (B, S, 3*H*dk)
    qkv = qkv.reshape(B, S, n_heads, 3 * d_k)
    q, k, v = jnp.split(qkv, 3, axis=-1)                       # each (B, S, H, dk)
    attn = jnp.einsum('bihd,bjhd->bijh', q, k) * (d_k ** -0.5)
    attn = jax.nn.softmax(attn, axis=2)
    res = jnp.einsum('bijh,bjhd->bihd', attn, v)
    res = res.reshape(B, S, n_heads * d_k)
    res = res @ out_w.T + out_b
    res = res + xs
    return res.transpose(0, 2, 1).reshape(B, C, H, W)


def _run_case(key, B, C, H, W, n_heads, d_k):
    k_x, k_pw, k_pb, k_ow, k_ob = jax.random.split(key, 5)
    HD = n_heads * d_k

    # nn.Linear default init: U(-1/sqrt(fan_in), 1/sqrt(fan_in))
    pb = 1.0 / (C ** 0.5)
    proj_w = jax.random.uniform(k_pw, (3 * HD, C), jnp.float32, -pb, pb)
    proj_b = jax.random.uniform(k_pb, (3 * HD,), jnp.float32, -pb, pb)
    ob = 1.0 / (HD ** 0.5)
    out_w = jax.random.uniform(k_ow, (C, HD), jnp.float32, -ob, ob)
    out_b = jax.random.uniform(k_ob, (C,), jnp.float32, -ob, ob)

    x = jax.random.normal(k_x, (B, C, H, W), jnp.float32)
    t = jnp.zeros((B, 8), jnp.float32)  # ignored, matching forward(x, t)

    out = attention_block_forward(x, proj_w, proj_b, out_w, out_b,
                                  n_heads=n_heads, d_k=d_k, t=t)
    out = jax.block_until_ready(out)

    ref = _reference_attention(x, proj_w, proj_b, out_w, out_b, n_heads, d_k)
    assert out.shape == (B, C, H, W), out.shape
    # bf16 MXU operands with f32 accumulation -> relaxed tolerance vs f32 ref
    assert jnp.allclose(out, ref, atol=5e-2, rtol=5e-2), \
        float(jnp.max(jnp.abs(out - ref)))


if __name__ == "__main__":
    key = jax.random.PRNGKey(0)
    k1, k2 = jax.random.split(key)

    # n_channels=32 (consistent with GroupNorm(32, C) in the constructor, even
    # though norm is never applied in forward), 16x16 feature map.
    _run_case(k1, B=2, C=32, H=16, W=16, n_heads=1, d_k=32)   # module defaults
    _run_case(k2, B=2, C=32, H=16, W=16, n_heads=2, d_k=32)   # multi-head path

    print("KERNEL_OK")
</pallas_src>

<mosaic_0001>
module attributes {stable_mosaic.version = 11 : i64} {
  func.func @_attention_kernel(%arg0: i32, %arg1: memref<1x32x256xf32, #tpu.memory_space<vmem>>, %arg2: memref<96x32xbf16, #tpu.memory_space<vmem>>, %arg3: memref<96x1xf32, #tpu.memory_space<vmem>>, %arg4: memref<32x32xbf16, #tpu.memory_space<vmem>>, %arg5: memref<32x1xf32, #tpu.memory_space<vmem>>, %arg6: memref<1x32x256xf32, #tpu.memory_space<vmem>>) attributes {dimension_semantics = [#tpu.dimension_semantics<parallel>], iteration_bounds = array<i64: 2>, scalar_prefetch = 0 : i64, scratch_operands = 0 : i64, tpu.core_type = #tpu.core_type<tc>, window_params = [{transform_indices = @transform_0, window_bounds = array<i64: 1, 32, 256>}, {pipeline_mode = #tpu.pipeline_mode<synchronous>, transform_indices = @transform_1, window_bounds = array<i64: 96, 32>}, {pipeline_mode = #tpu.pipeline_mode<synchronous>, transform_indices = @transform_2, window_bounds = array<i64: 96, 1>}, {pipeline_mode = #tpu.pipeline_mode<synchronous>, transform_indices = @transform_3, window_bounds = array<i64: 32, 32>}, {pipeline_mode = #tpu.pipeline_mode<synchronous>, transform_indices = @transform_4, window_bounds = array<i64: 32, 1>}, {transform_indices = @transform_5, window_bounds = array<i64: 1, 32, 256>}]} {
    %c0 = arith.constant 0 : index
    %c0_0 = arith.constant 0 : index
    %c0_1 = arith.constant 0 : index
    %0 = vector.load %arg1[%c0, %c0_0, %c0_1] : memref<1x32x256xf32, #tpu.memory_space<vmem>>, vector<1x32x256xf32>
    %1 = vector.shape_cast %0 : vector<1x32x256xf32> to vector<32x256xf32>
    %2 = arith.truncf %1 : vector<32x256xf32> to vector<32x256xbf16>
    %c0_2 = arith.constant 0 : index
    %c0_3 = arith.constant 0 : index
    %3 = vector.load %arg2[%c0_2, %c0_3] : memref<96x32xbf16, #tpu.memory_space<vmem>>, vector<96x32xbf16>
    %cst = arith.constant dense<0.000000e+00> : vector<96x256xf32>
    %4 = tpu.matmul %3, %2, %cst {dimension_numbers = #tpu.dot_dimension_numbers<[1], [0], [0], [1], [0, 0, 1, 1], [], []>} : vector<96x32xbf16>, vector<32x256xbf16>, vector<96x256xf32> -> vector<96x256xf32>
    %c0_4 = arith.constant 0 : index
    %c0_5 = arith.constant 0 : index
    %5 = vector.load %arg3[%c0_4, %c0_5] : memref<96x1xf32, #tpu.memory_space<vmem>>, vector<96x1xf32>
    %6 = vector.broadcast %5 : vector<96x1xf32> to vector<96x256xf32>
    %7 = arith.addf %4, %6 : vector<96x256xf32>
    %8 = vector.extract_strided_slice %7 {offsets = [0, 0], sizes = [32, 256], strides = [1, 1]} : vector<96x256xf32> to vector<32x256xf32>
    %9 = arith.truncf %8 : vector<32x256xf32> to vector<32x256xbf16>
    %10 = vector.extract_strided_slice %7 {offsets = [32, 0], sizes = [32, 256], strides = [1, 1]} : vector<96x256xf32> to vector<32x256xf32>
    %11 = arith.truncf %10 : vector<32x256xf32> to vector<32x256xbf16>
    %12 = vector.extract_strided_slice %7 {offsets = [64, 0], sizes = [32, 256], strides = [1, 1]} : vector<96x256xf32> to vector<32x256xf32>
    %13 = arith.truncf %12 : vector<32x256xf32> to vector<32x256xbf16>
    %cst_6 = arith.constant dense<0.000000e+00> : vector<256x256xf32>
    %14 = tpu.matmul %11, %9, %cst_6 {dimension_numbers = #tpu.dot_dimension_numbers<[0], [0], [1], [1], [0, 1, 1, 1], [], []>} : vector<32x256xbf16>, vector<32x256xbf16>, vector<256x256xf32> -> vector<256x256xf32>
    %cst_7 = arith.constant dense<0xFF800000> : vector<256xf32>
    %15 = vector.multi_reduction <maximumf>, %14, %cst_7 [0] : vector<256x256xf32> to vector<256xf32>
    %16 = vector.shape_cast %15 : vector<256xf32> to vector<1x256xf32>
    %17 = vector.broadcast %16 : vector<1x256xf32> to vector<256x256xf32>
    %18 = arith.subf %14, %17 : vector<256x256xf32>
    %19 = math.exp %18 : vector<256x256xf32>
    %cst_8 = arith.constant dense<0.000000e+00> : vector<256xf32>
    %20 = vector.multi_reduction <add>, %19, %cst_8 [0] : vector<256x256xf32> to vector<256xf32>
    %21 = vector.shape_cast %20 : vector<256xf32> to vector<1x256xf32>
    %22 = arith.truncf %19 : vector<256x256xf32> to vector<256x256xbf16>
    %cst_9 = arith.constant dense<0.000000e+00> : vector<32x256xf32>
    %23 = tpu.matmul %13, %22, %cst_9 {dimension_numbers = #tpu.dot_dimension_numbers<[1], [0], [0], [1], [0, 0, 1, 1], [], []>} : vector<32x256xbf16>, vector<256x256xbf16>, vector<32x256xf32> -> vector<32x256xf32>
    %24 = tpu.reciprocal %21 {approx = true} : vector<1x256xf32> -> vector<1x256xf32>
    %25 = vector.broadcast %24 : vector<1x256xf32> to vector<32x256xf32>
    %26 = arith.mulf %23, %25 : vector<32x256xf32>
    %c0_10 = arith.constant 0 : index
    %c0_11 = arith.constant 0 : index
    %27 = vector.load %arg4[%c0_10, %c0_11] : memref<32x32xbf16, #tpu.memory_space<vmem>>, vector<32x32xbf16>
    %28 = arith.truncf %26 : vector<32x256xf32> to vector<32x256xbf16>
    %cst_12 = arith.constant dense<0.000000e+00> : vector<32x256xf32>
    %29 = tpu.matmul %27, %28, %cst_12 {dimension_numbers = #tpu.dot_dimension_numbers<[1], [0], [0], [1], [0, 0, 1, 1], [], []>} : vector<32x32xbf16>, vector<32x256xbf16>, vector<32x256xf32> -> vector<32x256xf32>
    %c0_13 = arith.constant 0 : index
    %c0_14 = arith.constant 0 : index
    %30 = vector.load %arg5[%c0_13, %c0_14] : memref<32x1xf32, #tpu.memory_space<vmem>>, vector<32x1xf32>
    %31 = vector.broadcast %30 : vector<32x1xf32> to vector<32x256xf32>
    %32 = arith.addf %29, %31 : vector<32x256xf32>
    %c0_15 = arith.constant 0 : index
    %c0_16 = arith.constant 0 : index
    %c0_17 = arith.constant 0 : index
    %33 = vector.load %arg1[%c0_15, %c0_16, %c0_17] : memref<1x32x256xf32, #tpu.memory_space<vmem>>, vector<1x32x256xf32>
    %34 = vector.shape_cast %33 : vector<1x32x256xf32> to vector<32x256xf32>
    %35 = arith.addf %32, %34 : vector<32x256xf32>
    %c0_18 = arith.constant 0 : index
    %c0_19 = arith.constant 0 : index
    %c0_20 = arith.constant 0 : index
    %36 = vector.load %arg6[%c0_18, %c0_19, %c0_20] : memref<1x32x256xf32, #tpu.memory_space<vmem>>, vector<1x32x256xf32>
    %37 = vector.shape_cast %36 : vector<1x32x256xf32> to vector<32x256xf32>
    %38 = vector.shape_cast %35 : vector<32x256xf32> to vector<1x32x256xf32>
    tpu.vector_store %arg6[%c0_18, %c0_19, %c0_20], %38 {strides = array<i32>} : memref<1x32x256xf32, #tpu.memory_space<vmem>>, vector<1x32x256xf32>,
    return
  }
  func.func @transform_0(%arg0: i32) -> (i32, i32, i32) {
    %c0_i32 = arith.constant 0 : i32
    %c0_i32_0 = arith.constant 0 : i32
    %c0_i32_1 = arith.constant 0 : i32
    return %arg0, %c0_i32, %c0_i32_0 : i32, i32, i32
  }
  func.func @transform_1(%arg0: i32) -> (i32, i32) {
    %c0_i32 = arith.constant 0 : i32
    %c0_i32_0 = arith.constant 0 : i32
    %c0_i32_1 = arith.constant 0 : i32
    return %c0_i32, %c0_i32_0 : i32, i32
  }
  func.func @transform_2(%arg0: i32) -> (i32, i32) {
    %c0_i32 = arith.constant 0 : i32
    %c0_i32_0 = arith.constant 0 : i32
    %c0_i32_1 = arith.constant 0 : i32
    return %c0_i32, %c0_i32_0 : i32, i32
  }
  func.func @transform_3(%arg0: i32) -> (i32, i32) {
    %c0_i32 = arith.constant 0 : i32
    %c0_i32_0 = arith.constant 0 : i32
    %c0_i32_1 = arith.constant 0 : i32
    return %c0_i32, %c0_i32_0 : i32, i32
  }
  func.func @transform_4(%arg0: i32) -> (i32, i32) {
    %c0_i32 = arith.constant 0 : i32
    %c0_i32_0 = arith.constant 0 : i32
    %c0_i32_1 = arith.constant 0 : i32
    return %c0_i32, %c0_i32_0 : i32, i32
  }
  func.func @transform_5(%arg0: i32) -> (i32, i32, i32) {
    %c0_i32 = arith.constant 0 : i32
    %c0_i32_0 = arith.constant 0 : i32
    %c0_i32_1 = arith.constant 0 : i32
    return %arg0, %c0_i32, %c0_i32_0 : i32, i32, i32
  }
}

</mosaic_0001>

<bundles_post_ra>
// kernel: tpu_custom_call.1
= control target key start
LH: loop header
LB: loop body
LE: loop exit
PB: predicated region body
PF: predicated region fallthrough
CT: control target
= control target key end

     0   :  { %10 = vsyncpa [#allocation3], 0  ;;  %s2628_s0 = inlined_call_operand.vmem [shape: f32[2,32,256], index: 0, kind: input, shape index: {}]   ;;  %s2629_s1 = inlined_call_operand.vmem [shape: bf16[96,32], index: 1, kind: input, shape index: {}]   ;;  %s2630_s2 = inlined_call_operand.vmem [shape: f32[96,1], index: 2, kind: input, shape index: {}]   ;;  %s2631_s3 = inlined_call_operand.vmem [shape: bf16[32,32], index: 3, kind: input, shape index: {}]   ;;  %s2632_s4 = inlined_call_operand.vmem [shape: f32[32,1], index: 4, kind: input, shape index: {}]   ;;  %s2633_s5 = inlined_call_operand.hbm [shape: f32[2,32,256], index: 5, kind: output, shape index: {}]  }
   0x1   :  { %12 = vsyncpa [#allocation3 + $0x1], 0  ;;  %s1711_s18 = smov 0   ;;  %s1713_s19 = smov 0  }
   0x2   :  { %s1715_s20 = smov 0   ;;  %s1717_s21 = smov 0  }
   0x3 LB: > { %s1732_s22 = sadd.s32 4294967295, %s1675_s21   ;;  %s1375_s23 = sadd.s32 4294967294, %s1675_s21   ;;  %s1675_s21 = sphi %s1717_s21, %s2807_s21   ;;  %s1671_s20 = sphi %s1715_s20, %s2806_s20   ;;  %s1667_s19 = sphi %s1713_s19, %s2805_s19   ;;  %s1663_s18 = sphi %s1711_s18, %s2804_s18  }
   0x4   : > { %s1736_s24 = sadd.s32 1, %s1675_s21   ;;  %s135_s25 = sadd.s32 1, %s1671_s20 }
   0x5   : > { %s132_s26 = ssub.s32 %s1675_s21, %s1736_s24  ;;  %p145_p0 = scmp.ne.s32.totalorder %s1671_s20, %s1667_s19 }
   0x6   : > { %p133_p1 = scmp.eq.s32.totalorder %s132_s26, 0  ;;  %p146_p2 = scmp.eq.s32.totalorder %s1732_s22, 1 }
   0x7   : > { %p151_p3 = scmp.ne.s32.totalorder %s1667_s19, %s1663_s18  ;;  %p152_p4 = scmp.eq.s32.totalorder %s1375_s23, 1 }
   0x8   : > { %s1747_s27 = scalar_select %p133_p1, %s1671_s20, %s135_s25  }
   0x9   : > { %p1749_p5 = por %p146_p2, %p145_p0  ;;  %p1753_p6 = por %p152_p4, %p151_p3 }
   0xa   : > { %p1378_p7 = scmp.ge.s32.totalorder %s1675_s21, 1  ;;  %p190_p8 = scmp.lt.s32.totalorder %s1675_s21, 3 }
   0xc   : > { %p191_p9 = pnand %p1378_p7, %p190_p8 }
   0xe   : > { %194 = sbr.rel (%p191_p9) target bundleno = 1323 (0x52b), region = 40 }
  0x15   : > { %p218_p10 = scmp.lt.s32.totalorder %s1732_s22, 1  ;;  %v2634_v0 = vmov 0   ;;  %v252_v1 = vld [vmem:[%s2630_s2 + $0x20] sm:$0xff]  ;;  %v254_v2 = vld [vmem:[%s2630_s2 + $0x30] sm:$0xff]  ;;  %v253_v3 = vld [vmem:[%s2630_s2 + $0x28] sm:$0xff]  ;;  %vm350_vm0 = vcmask 261120  }
  0x16   : > { %401 = vmatprep.mubr.bf16.mxu0 %v2634_v0  ;;  %1463 = vset.pattern.permute.xlu0 %v2634_v0  ;;  %v255_v4 = vld [vmem:[%s2630_s2 + $0x38] sm:$0xff]  ;;  %v248_v17 = vld [vmem:[%s2630_s2] sm:$0xff]  ;;  %v249_v18 = vld [vmem:[%s2630_s2 + $0x8] sm:$0xff]  ;;  %s215_s12 = sand.u32 1, %s1667_s19   ;;  %s1420_s16 = sshll.u32 %s1732_s22, 10 }
  0x17   : > { %s219_s30 = scalar_select %p218_p10, %s1732_s22, 1  ;;  %1464 = vset.pattern.permute.xlu1 %v2634_v0  ;;  %586 = vmatprep.mubr.bf16.mxu1 %v2634_v0  ;;  %v1465_v19 = vld [vmem:[%s2629_s1] sm:$0xff]   ;;  %v250_v20 = vld [vmem:[%s2630_s2 + $0x10] sm:$0xff]  ;;  %v251_v21 = vld [vmem:[%s2630_s2 + $0x18] sm:$0xff] }
  0x18   : > { %282 = vperm.xlu0 %1463, %v252_v1   ;;  %292 = vperm.xlu1 %1464, %v254_v2   ;;  %v1466_v22 = vld [vmem:[%s2629_s1 + $0x8] sm:$0xff]   ;;  %v1467_v23 = vld [vmem:[%s2629_s1 + $0x10] sm:$0xff]   ;;  %v1468_v24 = vld [vmem:[%s2629_s1 + $0x18] sm:$0xff]   ;;  %s1379_s14 = sshll.u32 %s215_s12, 6  ;;  %s2577_s26 = scalar_lea.hbm %s2633_s5, %s1420_s16 }
  0x19   : > { %s1419_s6 = sshll.u32 %s219_s30, 6  ;;  %v1469_v25 = vld [vmem:[%s2629_s1 + $0x20] sm:$0xff]   ;;  %v1470_v26 = vld [vmem:[%s2629_s1 + $0x28] sm:$0xff]   ;;  %s2560_s15 = scalar_lea.vmem [#allocation2], %s1379_s14 }
  0x1a   : > { %s1774_s13 = scalar_lea.vmem %s2628_s0, %s1419_s6  ;;  %s1313_s17 = sshll.u32 %s2560_s15, 4  ;;  %s2579_s17 = int_to_ptr.vmem [resolvable:$true] %s1313_s17 }
  0x1b   : > { %v225_v5 = vld [vmem:[%s1774_s13 + $0x8] sm:$0xff]  ;;  %v227_v6 = vld [vmem:[%s1774_s13 + $0x18] sm:$0xff]  ;;  %v224_v7 = vld [vmem:[%s1774_s13] sm:$0xff]  ;;  %s2587_s22 = scalar_lea.sflag [#allocation3], %s215_s12  ;;  %s1613_s30 = scalar_lea.vmem %s2579_s17, 1024 }
  0x1c   : > { %v233_v8 = vpack.c.bf16 %v227_v6, %v225_v5  ;;  %v226_v9 = vld [vmem:[%s1774_s13 + $0x10] sm:$0xff]  ;;  %v229_v10 = vld [vmem:[%s1774_s13 + $0x28] sm:$0xff]  ;;  %v231_v11 = vld [vmem:[%s1774_s13 + $0x38] sm:$0xff]  ;;  %287 = vperm.xlu0 %1463, %v253_v3   ;;  %297 = vperm.xlu1 %1464, %v255_v4   ;;  %p1614_p11 = scmp.ne.s32.totalorder %s2579_s17, %s1613_s30  ;;  %s1678_s6 = smov [#allocation2]  }
  0x1d   : > { %v232_v12 = vpack.c.bf16 %v226_v9, %v224_v7  ;;  %v235_v13 = vpack.c.bf16 %v231_v11, %v229_v10  ;;  %v228_v14 = vld [vmem:[%s1774_s13 + $0x20] sm:$0xff]  ;;  %v230_v15 = vld [vmem:[%s1774_s13 + $0x30] sm:$0xff]  ;;  %s1617_s7 = sshll.u32 %s1678_s6, 4  ;;  %s1618_s7 = int_to_ptr.vmem [resolvable:$false] %s1617_s7 }
  0x1e   : > { %369 = vmatprep.subr.bf16.mxu0 %v233_v8  ;;  %v234_v16 = vpack.c.bf16 %v230_v15, %v228_v14  ;;  %v257_v15 = vld [vmem:[%s2630_s2 + $0x48] sm:$0xff]  ;;  %p1615_p12 = pnand %p1614_p11, %p1749_p5  ;;  %s1619_s8 = scalar_lea.vmem %s1618_s7, 2048 }
  0x1f   : > { %370 = vmatpush1.bf16.msra.mxu0 %v232_v12  ;;  %p1620_p0 = scmp.lt.s32.totalorder %s2579_s17, %s1618_s7  ;;  %p1621_p1 = scmp.lt.s32.totalorder %s1619_s8, %s1613_s30 }
  0x20   : > { %371 = vmatprep.subr.bf16.mxu0 %v235_v13  ;;  %262 = vperm.xlu0 %1463, %v248_v17   ;;  %p1616_p13 = pneg %p1615_p12 }
  0x21   : > { %267 = vperm.xlu1 %1464, %v249_v18   ;;  %v259_v18 = vld [vmem:[%s2630_s2 + $0x58] sm:$0xff]  ;;  %p1622_p2 = por %p1621_p1, %p1620_p0 }
  0x23   : > { %372 = vmatpush1.bf16.msra.mxu0 %v234_v16  ;;  %p1623_p3 = pnand %p1622_p2, %p1616_p13 }
  0x24   : > { %272 = vperm.xlu0 %1463, %v250_v20  }
  0x25   : > { %277 = vperm.xlu1 %1464, %v251_v21  }
  0x26   : > { %1388 = vmatmul.mubr.msk.bf16.vlgmr.msra.gmra.mrb[0].mxu0 %vm350_vm0, %v1465_v19  ;;  %v256_v19 = vld [vmem:[%s2630_s2 + $0x40] sm:$0xff] }
  0x27   : > { %411 = vmatprep.mubr.bf16.mxu0 %v2634_v0 }
  0x2e   : > { %1389 = vmatmul.mubr.msk.bf16.gmra.mrb[4].mxu0 %vm350_vm0, %v1466_v22 }
  0x2f   : > { %421 = vmatprep.mubr.bf16.mxu0 %v2634_v0 }
  0x36   : > { %1390 = vmatmul.mubr.msk.bf16.gmra.mrb[8].mxu0 %vm350_vm0, %v1467_v23  ;;  %v1191_v23 = vld [vmem:[%s2632_s4 + $0x8] sm:$0xff] }
  0x37   : > { %431 = vmatprep.mubr.bf16.mxu0 %v2634_v0 }
  0x3e   : > { %1391 = vmatmul.mubr.msk.bf16.gmra.mrb[12].mxu0 %vm350_vm0, %v1468_v24  ;;  %v258_v24 = vld [vmem:[%s2630_s2 + $0x50] sm:$0xff] }
  0x3f   : > { %441 = vmatprep.mubr.bf16.mxu0 %v2634_v0 }
  0x46   : > { %1392 = vmatmul.mubr.msk.bf16.gmra.mrb[16].mxu0 %vm350_vm0, %v1469_v25  ;;  %v1193_v25 = vld [vmem:[%s2632_s4 + $0x18] sm:$0xff] }
  0x47   : > { %451 = vmatprep.mubr.bf16.mxu0 %v2634_v0 }
  0x4e   : > { %1393 = vmatmul.mubr.msk.bf16.gmra.mrb[20].mxu0 %vm350_vm0, %v1470_v26  ;;  %v1190_v26 = vld [vmem:[%s2632_s4] sm:$0xff] }
  0x97   : > { %v283_v27 = vpop.permute.xlu0 %282  ;;  %v293_v28 = vpop.permute.xlu1 %292 }
  0x9b   : > { %v288_v29 = vpop.permute.xlu0 %287  ;;  %v298_v30 = vpop.permute.xlu1 %297 }
  0x9f   : > { %v263_v31 = vpop.permute.xlu0 %262 }
  0xa0   : > { %v268_v33 = vpop.permute.xlu1 %267 }
  0xa3   : > { %v273_v43 = vpop.permute.xlu0 %272 }
  0xa4   : > { %v278_v45 = vpop.permute.xlu1 %277 }
  0xf9   : > { %v403_v32 = vpop.f32.mrb[0].mxu0 }
  0xfa   : > { %v405_v34 = vpop.f32.mrb[1].mxu0  ;;  %v404_v36 = vadd.f32 %v403_v32, %v263_v31 }
  0xfb   : > { %v407_v35 = vpop.f32.mrb[2].mxu0  ;;  %v406_v39 = vadd.f32 %v405_v34, %v263_v31 }
  0xfc   : > { %v408_v37 = vadd.f32 %v407_v35, %v268_v33  ;;  %v409_v38 = vpop.f32.mrb[3].mxu0 }
  0xfd   : > { %v410_v40 = vadd.f32 %v409_v38, %v268_v33 }
  0xfe   : > { %v462_v41 = vpack.c.bf16 %v408_v37, %v404_v36 }
  0xff   : > { %v463_v42 = vpack.c.bf16 %v410_v40, %v406_v39 }
 0x101   : > { %v413_v44 = vpop.f32.mrb[4].mxu0  ;;  %554 = vmatprep.subr.bf16.mxu1 %v463_v42 }
 0x102   : > { %v415_v46 = vpop.f32.mrb[5].mxu0  ;;  %555 = vmatpush1.bf16.msra.mxu1 %v462_v41  ;;  %v414_v48 = vadd.f32 %v413_v44, %v273_v43 }
 0x103   : > { %v417_v47 = vpop.f32.mrb[6].mxu0  ;;  %v416_v51 = vadd.f32 %v415_v46, %v273_v43 }
 0x104   : > { %v418_v49 = vadd.f32 %v417_v47, %v278_v45  ;;  %v419_v50 = vpop.f32.mrb[7].mxu0 }
 0x105   : > { %v420_v52 = vadd.f32 %v419_v50, %v278_v45 }
 0x106   : > { %v464_v53 = vpack.c.bf16 %v418_v49, %v414_v48 }
 0x107   : > { %v465_v54 = vpack.c.bf16 %v420_v52, %v416_v51 }
 0x109   : > { %v423_v55 = vpop.f32.mrb[8].mxu0  ;;  %556 = vmatprep.subr.bf16.mxu1 %v465_v54 }
 0x10a   : > { %v425_v56 = vpop.f32.mrb[9].mxu0  ;;  %557 = vmatpush1.bf16.msra.mxu1 %v464_v53  ;;  %v424_v58 = vadd.f32 %v423_v55, %v283_v27 }
 0x10b   : > { %v427_v57 = vpop.f32.mrb[10].mxu0  ;;  %v426_v61 = vadd.f32 %v425_v56, %v283_v27  ;;  %v1192_v27 = vld [vmem:[%s2632_s4 + $0x10] sm:$0xff] }
 0x10c   : > { %v428_v59 = vadd.f32 %v427_v57, %v288_v29  ;;  %v429_v60 = vpop.f32.mrb[11].mxu0 }
 0x10d   : > { %v430_v62 = vadd.f32 %v429_v60, %v288_v29 }
 0x10e   : > { %v466_v63 = vpack.c.bf16 %v428_v59, %v424_v58 }
 0x10f   : > { %v467_v1 = vpack.c.bf16 %v430_v62, %v426_v61 }
 0x110   : > { %474 = vxpose.xlu0.c.b16.start [1/2] (short) %v466_v63, 128 }
 0x111   : > { %v433_v2 = vpop.f32.mrb[12].mxu0  ;;  %490 = vxpose.xlu1.c.b16.start [1/2] (short) %v467_v1, 128 }
 0x112   : > { %v435_v3 = vpop.f32.mrb[13].mxu0  ;;  %v434_v5 = vadd.f32 %v433_v2, %v293_v28 }
 0x113   : > { %v437_v4 = vpop.f32.mrb[14].mxu0  ;;  %v436_v8 = vadd.f32 %v435_v3, %v293_v28 }
 0x114   : > { %v438_v6 = vadd.f32 %v437_v4, %v298_v30  ;;  %v439_v7 = vpop.f32.mrb[15].mxu0 }
 0x115   : > { %v440_v9 = vadd.f32 %v439_v7, %v298_v30 }
 0x116   : > { %v468_v10 = vpack.c.bf16 %v438_v6, %v434_v5 }
 0x117   : > { %v469_v11 = vpack.c.bf16 %v440_v9, %v436_v8 }
 0x118   : > { %475 = vxpose.xlu0.c.b16.end [2/2] (short) %v468_v10, 128 }
 0x119   : > { %491 = vxpose.xlu1.c.b16.end [2/2] (short) %v469_v11, 128  ;;  %v443_v12 = vpop.f32.mrb[16].mxu0 }
 0x11a   : > { %v445_v13 = vpop.f32.mrb[17].mxu0 }
 0x11b   : > { %v447_v14 = vpop.f32.mrb[18].mxu0 }
 0x11c   : > { %v449_v16 = vpop.f32.mrb[19].mxu0 }
 0x121   : > { %v1834_v17 = vpop.f32.mrb[20].mxu0 }
 0x122   : > { %v455_v20 = vpop.f32.mrb[21].mxu0 }
 0x123   : > { %v457_v21 = vpop.f32.mrb[22].mxu0 }
 0x124   : > { %v459_v22 = vpop.f32.mrb[23].mxu0 }
 0x135   : > { %307 = vperm.xlu1 %1464, %v257_v15  }
 0x139   : > { %317 = vperm.xlu1 %1464, %v259_v18   ;;  %302 = vperm.xlu0 %1463, %v256_v19  }
 0x13d   : > { %1201 = vperm.xlu1 %1464, %v1191_v23   ;;  %312 = vperm.xlu0 %1463, %v258_v24  }
 0x141   : > { %1211 = vperm.xlu1 %1464, %v1193_v25   ;;  %1196 = vperm.xlu0 %1463, %v1190_v26  }
 0x145   : > { %1206 = vperm.xlu0 %1463, %v1192_v27  }
 0x17a   : > { %v482_v28 = vpop.trf.xlu0 }
 0x17b   : > { %1394 = vmatmul.mubr.msk.bf16.vlgmr.msra.gmra.mrb[0].mxu1 %vm350_vm0, %v482_v28  ;;  %v498_v30 = vpop.trf.xlu1 }
 0x17c   : > { %596 = vmatprep.mubr.bf16.mxu1 %v2634_v0 }
 0x17e   : > { %v483_v29 = vpop.trf.xlu0 }
 0x17f   : > { %v499_v32 = vpop.trf.xlu1 }
 0x182   : > { %v484_v31 = vpop.trf.xlu0 }
 0x183   : > { %1395 = vmatmul.mubr.msk.bf16.gmra.mrb[4].mxu1 %vm350_vm0, %v483_v29  ;;  %v500_v34 = vpop.trf.xlu1 }
 0x184   : > { %606 = vmatprep.mubr.bf16.mxu1 %v2634_v0 }
 0x186   : > { %v485_v33 = vpop.trf.xlu0 }
 0x187   : > { %v501_v35 = vpop.trf.xlu1 }
 0x18a   : > { %v486_v36 = vpop.trf.xlu0 }
 0x18b   : > { %1396 = vmatmul.mubr.msk.bf16.gmra.mrb[8].mxu1 %vm350_vm0, %v484_v31  ;;  %v502_v37 = vpop.trf.xlu1 }
 0x18c   : > { %616 = vmatprep.mubr.bf16.mxu1 %v2634_v0 }
 0x18e   : > { %v487_v38 = vpop.trf.xlu0 }
 0x18f   : > { %v503_v39 = vpop.trf.xlu1 }
 0x192   : > { %v488_v40 = vpop.trf.xlu0 }
 0x193   : > { %1397 = vmatmul.mubr.msk.bf16.gmra.mrb[12].mxu1 %vm350_vm0, %v485_v33  ;;  %v504_v41 = vpop.trf.xlu1 }
 0x194   : > { %626 = vmatprep.mubr.bf16.mxu1 %v2634_v0 }
 0x196   : > { %v489_v43 = vpop.trf.xlu0 }
 0x197   : > { %v505_v42 = vpop.trf.xlu1 }
 0x19b   : > { %1398 = vmatmul.mubr.msk.bf16.gmra.mrb[16].mxu1 %vm350_vm0, %v486_v36 }
 0x19c   : > { %636 = vmatprep.mubr.bf16.mxu1 %v2634_v0 }
 0x1a3   : > { %1399 = vmatmul.mubr.msk.bf16.gmra.mrb[20].mxu1 %vm350_vm0, %v487_v38 }
 0x1a4   : > { %646 = vmatprep.mubr.bf16.mxu1 %v2634_v0 }
 0x1ab   : > { %1400 = vmatmul.mubr.msk.bf16.gmra.mrb[24].mxu1 %vm350_vm0, %v488_v40 }
 0x1ac   : > { %656 = vmatprep.mubr.bf16.mxu1 %v2634_v0 }
 0x1b3   : > { %1401 = vmatmul.mubr.msk.bf16.gmra.mrb[28].mxu1 %vm350_vm0, %v489_v43 }
 0x1b4   : > { %v308_v44 = vpop.permute.xlu1 %307  ;;  %666 = vmatprep.mubr.bf16.mxu1 %v2634_v0 }
 0x1b5   : > { %v1873_v45 = vadd.f32 %v447_v14, %v308_v44  ;;  %v450_v47 = vadd.f32 %v449_v16, %v308_v44 }
 0x1b7   : > { %2686 = vst [vmem:[#allocation5_spill] sm:$0xff] %v1873_v45 }
 0x1b8   : > { %v303_v46 = vpop.permute.xlu0 %302  ;;  %v318_v50 = vpop.permute.xlu1 %317 }
 0x1b9   : > { %v1875_v48 = vadd.f32 %v443_v12, %v303_v46  ;;  %v446_v49 = vadd.f32 %v445_v13, %v303_v46  ;;  %v1881_v54 = vadd.f32 %v457_v21, %v318_v50  ;;  %v1883_v55 = vadd.f32 %v459_v22, %v318_v50 }
 0x1bb   : > { %2687 = vst [vmem:[#allocation6_spill] sm:$0xff] %v1875_v48  ;;  %v471_v52 = vpack.c.bf16 %v450_v47, %v446_v49  ;;  %1402 = vmatmul.mubr.msk.bf16.gmra.mrb[32].mxu1 %vm350_vm0, %v498_v30  ;;  %2688 = vst [vmem:[#allocation7_spill] sm:$0xff] %v1881_v54 }
 0x1bc   : > { %v313_v53 = vpop.permute.xlu0 %312  ;;  %676 = vmatprep.mubr.bf16.mxu1 %v2634_v0  ;;  %2689 = vst [vmem:[#allocation8_spill] sm:$0xff] %v1883_v55 }
 0x1bd   : > { %v1886_v56 = vadd.f32 %v1834_v17, %v313_v53  ;;  %v1888_v57 = vadd.f32 %v455_v20, %v313_v53  ;;  %1151 = vmatprep.mubr.bf16.mxu0 %v471_v52 }
 0x1bf   : > { %2690 = vst [vmem:[#allocation9_spill] sm:$0xff] %v1886_v56  ;;  %2691 = vst [vmem:[#allocation10_spill] sm:$0xff] %v1888_v57 }
 0x1c3   : > { %1403 = vmatmul.mubr.msk.bf16.gmra.mrb[36].mxu1 %vm350_vm0, %v499_v32 }
 0x1c4   : > { %686 = vmatprep.mubr.bf16.mxu1 %v2634_v0 }
 0x1cb   : > { %1404 = vmatmul.mubr.msk.bf16.gmra.mrb[40].mxu1 %vm350_vm0, %v500_v34 }
 0x1cc   : > { %696 = vmatprep.mubr.bf16.mxu1 %v2634_v0 }
 0x1d3   : > { %1405 = vmatmul.mubr.msk.bf16.gmra.mrb[44].mxu1 %vm350_vm0, %v501_v35 }
 0x1d4   : > { %706 = vmatprep.mubr.bf16.mxu1 %v2634_v0 }
 0x1db   : > { %1406 = vmatmul.mubr.msk.bf16.gmra.mrb[48].mxu1 %vm350_vm0, %v502_v37 }
 0x1dc   : > { %716 = vmatprep.mubr.bf16.mxu1 %v2634_v0 }
 0x1e3   : > { %1407 = vmatmul.mubr.msk.bf16.gmra.mrb[52].mxu1 %vm350_vm0, %v503_v39 }
 0x1e4   : > { %726 = vmatprep.mubr.bf16.mxu1 %v2634_v0 }
 0x1eb   : > { %1408 = vmatmul.mubr.msk.bf16.gmra.mrb[56].mxu1 %vm350_vm0, %v504_v41 }
 0x1ec   : > { %736 = vmatprep.mubr.bf16.mxu1 %v2634_v0 }
 0x1f3   : > { %1409 = vmatmul.mubr.msk.bf16.gmra.mrb[60].mxu1 %vm350_vm0, %v505_v42 }
 0x24e   : > { %v1907_v60 = vpop.f32.mrb[0].mxu1 }
 0x24f   : > { %v1909_v61 = vpop.f32.mrb[1].mxu1 }
 0x250   : > { %v1911_v62 = vpop.f32.mrb[2].mxu1 }
 0x251   : > { %v1913_v63 = vpop.f32.mrb[3].mxu1 }
 0x256   : > { %v1915_v1 = vpop.f32.mrb[4].mxu1 }
 0x257   : > { %v747_v2 = vmax.f32 %v1907_v60, %v1915_v1  ;;  %v1919_v3 = vpop.f32.mrb[5].mxu1 }
 0x258   : > { %v784_v4 = vmax.f32 %v1909_v61, %v1919_v3  ;;  %v1923_v5 = vpop.f32.mrb[6].mxu1 }
 0x259   : > { %v748_v6 = vmax.f32 %v1911_v62, %v1923_v5  ;;  %v1927_v7 = vpop.f32.mrb[7].mxu1 }
 0x25a   : > { %v785_v8 = vmax.f32 %v1913_v63, %v1927_v7 }
 0x25e   : > { %v1931_v9 = vpop.f32.mrb[8].mxu1 }
 0x25f   : > { %v749_v10 = vmax.f32 %v747_v2, %v1931_v9  ;;  %v1934_v11 = vpop.f32.mrb[9].mxu1 }
 0x260   : > { %v786_v12 = vmax.f32 %v784_v4, %v1934_v11  ;;  %v1937_v13 = vpop.f32.mrb[10].mxu1 }
 0x261   : > { %v750_v14 = vmax.f32 %v748_v6, %v1937_v13  ;;  %v1940_v15 = vpop.f32.mrb[11].mxu1 }
 0x262   : > { %v787_v16 = vmax.f32 %v785_v8, %v1940_v15 }
 0x266   : > { %v1943_v17 = vpop.f32.mrb[12].mxu1 }
 0x267   : > { %v751_v18 = vmax.f32 %v749_v10, %v1943_v17  ;;  %v1946_v19 = vpop.f32.mrb[13].mxu1 }
 0x268   : > { %v788_v20 = vmax.f32 %v786_v12, %v1946_v19  ;;  %v1949_v21 = vpop.f32.mrb[14].mxu1 }
 0x269   : > { %v752_v22 = vmax.f32 %v750_v14, %v1949_v21  ;;  %v1952_v23 = vpop.f32.mrb[15].mxu1 }
 0x26a   : > { %v789_v24 = vmax.f32 %v787_v16, %v1952_v23 }
 0x26e   : > { %v1955_v25 = vpop.f32.mrb[16].mxu1 }
 0x26f   : > { %v753_v26 = vmax.f32 %v751_v18, %v1955_v25  ;;  %v1958_v27 = vpop.f32.mrb[17].mxu1 }
 0x270   : > { %v790_v28 = vmax.f32 %v788_v20, %v1958_v27  ;;  %v1961_v29 = vpop.f32.mrb[18].mxu1 }
 0x271   : > { %v754_v30 = vmax.f32 %v752_v22, %v1961_v29  ;;  %v1964_v31 = vpop.f32.mrb[19].mxu1 }
 0x272   : > { %v791_v32 = vmax.f32 %v789_v24, %v1964_v31 }
 0x276   : > { %v1967_v33 = vpop.f32.mrb[20].mxu1 }
 0x277   : > { %v755_v34 = vmax.f32 %v753_v26, %v1967_v33  ;;  %v1970_v35 = vpop.f32.mrb[21].mxu1 }
 0x278   : > { %v792_v36 = vmax.f32 %v790_v28, %v1970_v35  ;;  %v1973_v37 = vpop.f32.mrb[22].mxu1 }
 0x279   : > { %v756_v38 = vmax.f32 %v754_v30, %v1973_v37  ;;  %v1976_v39 = vpop.f32.mrb[23].mxu1 }
 0x27a   : > { %2692 = vst [vmem:[#allocation11_spill] sm:$0xff] %v1976_v39  ;;  %v793_v40 = vmax.f32 %v791_v32, %v1976_v39 }
 0x27e   : > { %v1979_v41 = vpop.f32.mrb[24].mxu1 }
 0x27f   : > { %v757_v42 = vmax.f32 %v755_v34, %v1979_v41  ;;  %v1982_v43 = vpop.f32.mrb[25].mxu1 }
 0x280   : > { %2693 = vst [vmem:[#allocation12_spill] sm:$0xff] %v1982_v43  ;;  %v794_v44 = vmax.f32 %v792_v36, %v1982_v43  ;;  %v1985_v46 = vpop.f32.mrb[26].mxu1 }
 0x281   : > { %v758_v47 = vmax.f32 %v756_v38, %v1985_v46  ;;  %v1988_v49 = vpop.f32.mrb[27].mxu1 }
 0x282   : > { %2694 = vst [vmem:[#allocation13_spill] sm:$0xff] %v1988_v49  ;;  %v795_v50 = vmax.f32 %v793_v40, %v1988_v49 }
 0x286   : > { %v1991_v52 = vpop.f32.mrb[28].mxu1 }
 0x287   : > { %v759_v53 = vmax.f32 %v757_v42, %v1991_v52  ;;  %v1994_v2 = vpop.f32.mrb[29].mxu1 }
 0x288   : > { %2695 = vst [vmem:[#allocation14_spill] sm:$0xff] %v1994_v2  ;;  %v796_v4 = vmax.f32 %v794_v44, %v1994_v2  ;;  %v1997_v6 = vpop.f32.mrb[30].mxu1 }
 0x289   : > { %v760_v8 = vmax.f32 %v758_v47, %v1997_v6  ;;  %v2000_v10 = vpop.f32.mrb[31].mxu1 }
 0x28a   : > { %2696 = vst [vmem:[#allocation15_spill] sm:$0xff] %v2000_v10  ;;  %v797_v12 = vmax.f32 %v795_v50, %v2000_v10 }
 0x28e   : > { %v2003_v14 = vpop.f32.mrb[32].mxu1 }
 0x28f   : > { %v761_v16 = vmax.f32 %v759_v53, %v2003_v14  ;;  %v2006_v18 = vpop.f32.mrb[33].mxu1 }
 0x290   : > { %2697 = vst [vmem:[#allocation16_spill] sm:$0xff] %v2006_v18  ;;  %v798_v20 = vmax.f32 %v796_v4, %v2006_v18  ;;  %v2009_v22 = vpop.f32.mrb[34].mxu1 }
 0x291   : > { %v762_v24 = vmax.f32 %v760_v8, %v2009_v22  ;;  %v2012_v26 = vpop.f32.mrb[35].mxu1 }
 0x292   : > { %2698 = vst [vmem:[#allocation17_spill] sm:$0xff] %v2012_v26  ;;  %v799_v28 = vmax.f32 %v797_v12, %v2012_v26 }
 0x296   : > { %v2015_v30 = vpop.f32.mrb[36].mxu1 }
 0x297   : > { %v763_v32 = vmax.f32 %v761_v16, %v2015_v30  ;;  %v2018_v34 = vpop.f32.mrb[37].mxu1 }
 0x298   : > { %2699 = vst [vmem:[#allocation18_spill] sm:$0xff] %v2018_v34  ;;  %v800_v36 = vmax.f32 %v798_v20, %v2018_v34  ;;  %v2021_v38 = vpop.f32.mrb[38].mxu1 }
 0x299   : > { %v764_v40 = vmax.f32 %v762_v24, %v2021_v38  ;;  %v2024_v42 = vpop.f32.mrb[39].mxu1 }
 0x29a   : > { %2700 = vst [vmem:[#allocation19_spill] sm:$0xff] %v2024_v42  ;;  %v801_v44 = vmax.f32 %v799_v28, %v2024_v42 }
 0x29e   : > { %v2027_v47 = vpop.f32.mrb[40].mxu1 }
 0x29f   : > { %v765_v50 = vmax.f32 %v763_v32, %v2027_v47  ;;  %v2030_v53 = vpop.f32.mrb[41].mxu1 }
 0x2a0   : > { %2701 = vst [vmem:[#allocation20_spill] sm:$0xff] %v2030_v53  ;;  %v802_v4 = vmax.f32 %v800_v36, %v2030_v53  ;;  %v2033_v8 = vpop.f32.mrb[42].mxu1 }
 0x2a1   : > { %v766_v12 = vmax.f32 %v764_v40, %v2033_v8  ;;  %v2036_v16 = vpop.f32.mrb[43].mxu1 }
 0x2a2   : > { %2702 = vst [vmem:[#allocation21_spill] sm:$0xff] %v2036_v16  ;;  %v803_v20 = vmax.f32 %v801_v44, %v2036_v16 }
 0x2a6   : > { %v2039_v24 = vpop.f32.mrb[44].mxu1 }
 0x2a7   : > { %v767_v28 = vmax.f32 %v765_v50, %v2039_v24  ;;  %v2042_v0 = vpop.f32.mrb[45].mxu1 }
 0x2a8   : > { %2703 = vst [vmem:[#allocation22_spill] sm:$0xff] %v2042_v0  ;;  %v804_v32 = vmax.f32 %v802_v4, %v2042_v0  ;;  %v2045_v58 = vpop.f32.mrb[46].mxu1 }
 0x2a9   : > { %v768_v36 = vmax.f32 %v766_v12, %v2045_v58  ;;  %v2048_v59 = vpop.f32.mrb[47].mxu1 }
 0x2aa   : > { %2704 = vst [vmem:[#allocation23_spill] sm:$0xff] %v2048_v59  ;;  %v805_v40 = vmax.f32 %v803_v20, %v2048_v59 }
 0x2ae   : > { %v2051_v51 = vpop.f32.mrb[48].mxu1 }
 0x2af   : > { %v769_v44 = vmax.f32 %v767_v28, %v2051_v51  ;;  %v2054_v56 = vpop.f32.mrb[49].mxu1 }
 0x2b0   : > { %2705 = vst [vmem:[#allocation24_spill] sm:$0xff] %v2054_v56  ;;  %v806_v50 = vmax.f32 %v804_v32, %v2054_v56  ;;  %v2057_v54 = vpop.f32.mrb[50].mxu1 }
 0x2b1   : > { %v770_v4 = vmax.f32 %v768_v36, %v2057_v54  ;;  %v2060_v57 = vpop.f32.mrb[51].mxu1 }
 0x2b2   : > { %2706 = vst [vmem:[#allocation25_spill] sm:$0xff] %v2060_v57  ;;  %v807_v12 = vmax.f32 %v805_v40, %v2060_v57 }
 0x2b6   : > { %v2063_v55 = vpop.f32.mrb[52].mxu1 }
 0x2b7   : > { %v771_v20 = vmax.f32 %v769_v44, %v2063_v55  ;;  %v2066_v48 = vpop.f32.mrb[53].mxu1 }
 0x2b8   : > { %2707 = vst [vmem:[#allocation26_spill] sm:$0xff] %v2066_v48  ;;  %v808_v28 = vmax.f32 %v806_v50, %v2066_v48  ;;  %v2069_v45 = vpop.f32.mrb[54].mxu1 }
 0x2b9   : > { %v772_v32 = vmax.f32 %v770_v4, %v2069_v45  ;;  %v2072_v56 = vpop.f32.mrb[55].mxu1 }
 0x2ba   : > { %2708 = vst [vmem:[#allocation27_spill] sm:$0xff] %v2072_v56  ;;  %v809_v36 = vmax.f32 %v807_v12, %v2072_v56 }
 0x2be   : > { %v2075_v59 = vpop.f32.mrb[56].mxu1 }
 0x2bf   : > { %v773_v40 = vmax.f32 %v771_v20, %v2075_v59  ;;  %v2078_v57 = vpop.f32.mrb[57].mxu1 }
 0x2c0   : > { %2709 = vst [vmem:[#allocation28_spill] sm:$0xff] %v2078_v57  ;;  %v810_v44 = vmax.f32 %v808_v28, %v2078_v57  ;;  %v2081_v0 = vpop.f32.mrb[58].mxu1 }
 0x2c1   : > { %v774_v50 = vmax.f32 %v772_v32, %v2081_v0  ;;  %v2084_v48 = vpop.f32.mrb[59].mxu1 }
 0x2c2   : > { %2710 = vst [vmem:[#allocation29_spill] sm:$0xff] %v2084_v48  ;;  %v811_v4 = vmax.f32 %v809_v36, %v2084_v48 }
 0x2c6   : > { %v2087_v16 = vpop.f32.mrb[60].mxu1 }
 0x2c7   : > { %v775_v12 = vmax.f32 %v773_v40, %v2087_v16  ;;  %v2090_v56 = vpop.f32.mrb[61].mxu1 }
 0x2c8   : > { %2711 = vst [vmem:[#allocation30_spill] sm:$0xff] %v2090_v56  ;;  %v812_v20 = vmax.f32 %v810_v44, %v2090_v56  ;;  %v2093_v53 = vpop.f32.mrb[62].mxu1 }
 0x2c9   : > { %v776_v28 = vmax.f32 %v774_v50, %v2093_v53  ;;  %v2096_v57 = vpop.f32.mrb[63].mxu1 }
 0x2ca   : > { %2712 = vst [vmem:[#allocation31_spill] sm:$0xff] %v2096_v57  ;;  %v813_v32 = vmax.f32 %v811_v4, %v2096_v57 }
 0x2cb   : > { %v777_v42 = vmax.f32 %v775_v12, %v776_v28 }
 0x2cc   : > { %v814_v34 = vmax.f32 %v812_v20, %v813_v32 }
 0x2cd   : > { %v778_v26 = vrot.slane %v777_v42, 4 }
 0x2ce   : > { %v815_v36 = vrot.slane %v814_v34, 4 }
 0x2cf   : > { %v779_v48 = vmax.f32 %v777_v42, %v778_v26 }
 0x2d0   : > { %v816_v18 = vmax.f32 %v814_v34, %v815_v36 }
 0x2d1   : > { %v780_v10 = vrot.slane %v779_v48, 2 }
 0x2d2   : > { %v817_v40 = vrot.slane %v816_v18, 2 }
 0x2d3   : > { %v781_v2 = vmax.f32 %v779_v48, %v780_v10  ;;  %v2732_v10 = vld [vmem:[#allocation30_spill] sm:$0xff] }
 0x2d4   : > { %v818_v49 = vmax.f32 %v816_v18, %v817_v40 }
 0x2d5   : > { %v782_v43 = vrot.slane %v781_v2, 1 }
 0x2d6   : > { %v819_v44 = vrot.slane %v818_v49, 1 }
 0x2d7   : > { %v2099_v56 = vmax.f32 %v781_v2, %v782_v43 }
 0x2d8   : > { %v2101_v39 = vmax.f32 %v818_v49, %v819_v44 }
 0x2d9   : > { %v821_v50 = vsub.f32 %v1907_v60, %v2099_v56  ;;  %v823_v4 = vsub.f32 %v1911_v62, %v2099_v56  ;;  %v825_v26 = vsub.f32 %v1915_v1, %v2099_v56  ;;  %v827_v34 = vsub.f32 %v1923_v5, %v2099_v56 }
 0x2da   : > { %v829_v48 = vsub.f32 %v1931_v9, %v2099_v56  ;;  %v831_v43 = vsub.f32 %v1937_v13, %v2099_v56  ;;  %v833_v49 = vsub.f32 %v1943_v17, %v2099_v56  ;;  %v835_v60 = vsub.f32 %v1949_v21, %v2099_v56 }
 0x2db   : > { %v837_v62 = vsub.f32 %v1955_v25, %v2099_v56  ;;  %v839_v1 = vsub.f32 %v1961_v29, %v2099_v56  ;;  %v841_v5 = vsub.f32 %v1967_v33, %v2099_v56  ;;  %v843_v9 = vsub.f32 %v1973_v37, %v2099_v56 }
 0x2dc   : > { %v845_v13 = vsub.f32 %v1979_v41, %v2099_v56  ;;  %v847_v17 = vsub.f32 %v1985_v46, %v2099_v56  ;;  %v849_v21 = vsub.f32 %v1991_v52, %v2099_v56  ;;  %v851_v25 = vsub.f32 %v1997_v6, %v2099_v56 }
 0x2dd   : > { %v853_v29 = vsub.f32 %v2003_v14, %v2099_v56  ;;  %v855_v33 = vsub.f32 %v2009_v22, %v2099_v56  ;;  %v857_v37 = vsub.f32 %v2015_v30, %v2099_v56  ;;  %v859_v41 = vsub.f32 %v2021_v38, %v2099_v56 }
 0x2de   : > { %v861_v46 = vsub.f32 %v2027_v47, %v2099_v56  ;;  %v863_v52 = vsub.f32 %v2033_v8, %v2099_v56  ;;  %v865_v2 = vsub.f32 %v2039_v24, %v2099_v56  ;;  %v867_v6 = vsub.f32 %v2045_v58, %v2099_v56 }
 0x2df   : > { %v885_v47 = vmul.f32 1.442695, %v821_v50  ;;  %v889_v8 = vmul.f32 1.442695, %v823_v4  ;;  %v893_v24 = vmul.f32 1.442695, %v825_v26 }
 0x2e0   : > { %v897_v20 = vmul.f32 1.442695, %v827_v34  ;;  %v901_v32 = vmul.f32 1.442695, %v829_v48  ;;  %v905_v36 = vmul.f32 1.442695, %v831_v43 }
 0x2e1   : > { %1473 = vpow2.f32 %v885_v47  ;;  %v909_v40 = vmul.f32 1.442695, %v833_v49  ;;  %v913_v44 = vmul.f32 1.442695, %v835_v60  ;;  %v917_v58 = vmul.f32 1.442695, %v837_v62 }
 0x2e2   : > { %1475 = vpow2.f32 %v889_v8  ;;  %v921_v42 = vmul.f32 1.442695, %v839_v1  ;;  %v925_v50 = vmul.f32 1.442695, %v841_v5  ;;  %v929_v4 = vmul.f32 1.442695, %v843_v9 }
 0x2e3   : > { %1477 = vpow2.f32 %v893_v24  ;;  %v933_v26 = vmul.f32 1.442695, %v845_v13  ;;  %v937_v12 = vmul.f32 1.442695, %v847_v17  ;;  %v941_v34 = vmul.f32 1.442695, %v849_v21 }
 0x2e4   : > { %1479 = vpow2.f32 %v897_v20  ;;  %v945_v38 = vmul.f32 1.442695, %v851_v25  ;;  %v949_v28 = vmul.f32 1.442695, %v853_v29  ;;  %v953_v47 = vmul.f32 1.442695, %v855_v33 }
 0x2e5   : > { %1481 = vpow2.f32 %v901_v32  ;;  %v957_v48 = vmul.f32 1.442695, %v857_v37  ;;  %v961_v43 = vmul.f32 1.442695, %v859_v41  ;;  %v965_v8 = vmul.f32 1.442695, %v861_v46 }
 0x2e6   : > { %1483 = vpow2.f32 %v905_v36  ;;  %v2171_v49 = vmul.f32 1.442695, %v863_v52  ;;  %v2173_v60 = vmul.f32 1.442695, %v865_v2  ;;  %v2175_v62 = vmul.f32 1.442695, %v867_v6 }
 0x2e7   : > { %1485 = vpow2.f32 %v909_v40  ;;  %v2713_v46 = vld [vmem:[#allocation11_spill] sm:$0xff]  ;;  %v2715_v24 = vld [vmem:[#allocation13_spill] sm:$0xff]  ;;  %v2716_v36 = vld [vmem:[#allocation14_spill] sm:$0xff] }
 0x2e8   : > { %1487 = vpow2.f32 %v913_v44  ;;  %v2717_v44 = vld [vmem:[#allocation15_spill] sm:$0xff]  ;;  %v2719_v41 = vld [vmem:[#allocation17_spill] sm:$0xff]  ;;  %v2720_v37 = vld [vmem:[#allocation18_spill] sm:$0xff] }
 0x2e9   : > { %1489 = vpow2.f32 %v917_v58  ;;  %v2714_v58 = vld [vmem:[#allocation12_spill] sm:$0xff]  ;;  %v2721_v40 = vld [vmem:[#allocation19_spill] sm:$0xff]  ;;  %v2723_v21 = vld [vmem:[#allocation21_spill] sm:$0xff] }
 0x2ea   : > { %1491 = vpow2.f32 %v921_v42  ;;  %v2722_v25 = vld [vmem:[#allocation20_spill] sm:$0xff]  ;;  %v2724_v20 = vld [vmem:[#allocation22_spill] sm:$0xff]  ;;  %v2725_v9 = vld [vmem:[#allocation23_spill] sm:$0xff] }
 0x2eb   : > { %v2185_v17 = vpop.eup %1473  ;;  %1493 = vpow2.f32 %v925_v50  ;;  %v2726_v50 = vld [vmem:[#allocation24_spill] sm:$0xff]  ;;  %v2727_v1 = vld [vmem:[#allocation25_spill] sm:$0xff] }
 0x2ec   : > { %v2193_v33 = vpop.eup %1475  ;;  %1495 = vpow2.f32 %v929_v4  ;;  %v2718_v4 = vld [vmem:[#allocation16_spill] sm:$0xff] }
 0x2ed   : > { %v2201_v2 = vpop.eup %1477  ;;  %1497 = vpow2.f32 %v933_v26  ;;  %v1013_v6 = vadd.f32 %v2193_v33, %v2185_v17  ;;  %v2731_v26 = vld [vmem:[#allocation29_spill] sm:$0xff] }
 0x2ee   : > { %v2209_v32 = vpop.eup %1479  ;;  %1499 = vpow2.f32 %v937_v12  ;;  %v2729_v12 = vld [vmem:[#allocation27_spill] sm:$0xff] }
 0x2ef   : > { %v2217_v52 = vpop.eup %1481  ;;  %1501 = vpow2.f32 %v941_v34  ;;  %v1014_v42 = vadd.f32 %v2201_v2, %v1013_v6 }
 0x2f0   : > { %v2224_v29 = vpop.eup %1483  ;;  %1503 = vpow2.f32 %v945_v38 }
 0x2f1   : > { %v2232_v13 = vpop.eup %1485  ;;  %1505 = vpow2.f32 %v949_v28  ;;  %v1015_v6 = vadd.f32 %v2209_v32, %v1014_v42 }
 0x2f2   : > { %v2239_v5 = vpop.eup %1487  ;;  %1507 = vpow2.f32 %v953_v47 }
 0x2f3   : > { %v2247_v22 = vpop.eup %1489  ;;  %1509 = vpow2.f32 %v957_v48  ;;  %v1016_v42 = vadd.f32 %v2217_v52, %v1015_v6  ;;  %v2733_v6 = vsub.f32 %v2051_v51, %v2099_v56 }
 0x2f4   : > { %v2254_v14 = vpop.eup %1491  ;;  %1511 = vpow2.f32 %v961_v43  ;;  %v2734_v43 = vsub.f32 %v2057_v54, %v2099_v56 }
 0x2f5   : > { %v2262_v30 = vpop.eup %1493  ;;  %1513 = vpow2.f32 %v965_v8  ;;  %v981_v38 = vmul.f32 1.442695, %v2733_v6  ;;  %v1017_v47 = vadd.f32 %v2224_v29, %v1016_v42  ;;  %v2735_v8 = vsub.f32 %v2063_v55, %v2099_v56 }
 0x2f6   : > { %v2268_v18 = vpop.eup %1495  ;;  %1515 = vpow2.f32 %v2171_v49  ;;  %v985_v28 = vmul.f32 1.442695, %v2734_v43  ;;  %v2736_v49 = vsub.f32 %v2069_v45, %v2099_v56  ;;  %v2740_v45 = vsub.f32 %v2087_v16, %v2099_v56 }
 0x2f7   : > { %v2274_v34 = vpop.eup %1497  ;;  %1517 = vpow2.f32 %v2173_v60  ;;  %v989_v48 = vmul.f32 1.442695, %v2735_v8  ;;  %v1018_v51 = vadd.f32 %v2232_v13, %v1017_v47  ;;  %v2737_v60 = vsub.f32 %v2075_v59, %v2099_v56 }
 0x2f8   : > { %v2281_v6 = vpop.eup %1499  ;;  %1519 = vpow2.f32 %v2175_v62  ;;  %v993_v42 = vmul.f32 1.442695, %v2736_v49  ;;  %v2738_v47 = vsub.f32 %v2081_v0, %v2099_v56 }
 0x2f9   : > { %v2287_v54 = vpop.eup %1501  ;;  %1521 = vpow2.f32 %v981_v38  ;;  %v997_v43 = vmul.f32 1.442695, %v2737_v60  ;;  %v1019_v55 = vadd.f32 %v2239_v5, %v1018_v51  ;;  %v1005_v38 = vmul.f32 1.442695, %v2740_v45 }
 0x2fa   : > { %v2293_v8 = vpop.eup %1503  ;;  %1523 = vpow2.f32 %v985_v28  ;;  %v1001_v62 = vmul.f32 1.442695, %v2738_v47  ;;  %v2741_v51 = vsub.f32 %v2093_v53, %v2099_v56  ;;  %v2744_v56 = vsub.f32 %v1919_v3, %v2101_v39 }
 0x2fb   : > { %v2298_v57 = vpop.eup %1505  ;;  %1525 = vpow2.f32 %v989_v48  ;;  %v1020_v49 = vadd.f32 %v2247_v22, %v1019_v55  ;;  %v2742_v48 = vsub.f32 %v1909_v61, %v2101_v39  ;;  %v2743_v55 = vsub.f32 %v1913_v63, %v2101_v39 }
 0x2fc   : > { %2739 = vst [vmem:[#allocation11_spill] sm:$0xff] %v2298_v57  ;;  %v2304_v59 = vpop.eup %1507  ;;  %1527 = vpow2.f32 %v993_v42  ;;  %v1009_v28 = vmul.f32 1.442695, %v2741_v51  ;;  %v895_v53 = vmul.f32 1.442695, %v2744_v56  ;;  %v2745_v61 = vsub.f32 %v1927_v7, %v2101_v39 }
 0x2fd   : > { %v2309_v60 = vpop.eup %1509  ;;  %1529 = vpow2.f32 %v997_v43  ;;  %v1021_v0 = vadd.f32 %v2254_v14, %v1020_v49  ;;  %v887_v47 = vmul.f32 1.442695, %v2742_v48  ;;  %v891_v42 = vmul.f32 1.442695, %v2743_v55 }
 0x2fe   : > { %v2315_v16 = vpop.eup %1511  ;;  %1531 = vpow2.f32 %v1001_v62  ;;  %v899_v49 = vmul.f32 1.442695, %v2745_v61  ;;  %v2746_v62 = vsub.f32 %v1934_v11, %v2101_v39  ;;  %v2747_v63 = vsub.f32 %v1940_v15, %v2101_v39 }
 0x2ff   : > { %v2323_v45 = vpop.eup %1513  ;;  %1533 = vpow2.f32 %v1005_v38  ;;  %v1022_v43 = vadd.f32 %v2262_v30, %v1021_v0  ;;  %v2748_v38 = vsub.f32 %v1946_v19, %v2101_v39  ;;  %v2749_v0 = vsub.f32 %v1952_v23, %v2101_v39 }
 0x300   : > { %v903_v51 = vmul.f32 1.442695, %v2746_v62  ;;  %v2332_v48 = vpop.eup %1515  ;;  %1535 = vpow2.f32 %v1009_v28  ;;  %v907_v3 = vmul.f32 1.442695, %v2747_v63  ;;  %v2750_v28 = vsub.f32 %v1958_v27, %v2101_v39 }
 0x301   : > { %v911_v55 = vmul.f32 1.442695, %v2748_v38  ;;  %v915_v7 = vmul.f32 1.442695, %v2749_v0  ;;  %v2343_v56 = vpop.eup %1517  ;;  %v1023_v11 = vadd.f32 %v2268_v18, %v1022_v43  ;;  %1537 = vpow2.f32 %v887_v47 }
 0x302   : > { %v919_v61 = vmul.f32 1.442695, %v2750_v28  ;;  %v2751_v15 = vsub.f32 %v1964_v31, %v2101_v39  ;;  %v2352_v63 = vpop.eup %1519  ;;  %1539 = vpow2.f32 %v891_v42 }
 0x303   : > { %v2360_v43 = vpop.eup %1521  ;;  %v1024_v27 = vadd.f32 %v2274_v34, %v1023_v11  ;;  %1541 = vpow2.f32 %v895_v53 }
 0x304   : > { %v923_v62 = vmul.f32 1.442695, %v2751_v15  ;;  %v2367_v38 = vpop.eup %1523  ;;  %1543 = vpow2.f32 %v899_v49  ;;  %v2752_v49 = vsub.f32 %v1970_v35, %v2101_v39  ;;  %v2753_v15 = vsub.f32 %v2713_v46, %v2101_v39 }
 0x305   : > { %v2375_v11 = vpop.eup %1525  ;;  %v1025_v53 = vadd.f32 %v2281_v6, %v1024_v27  ;;  %1545 = vpow2.f32 %v903_v51 }
 0x306   : > { %v2382_v31 = vpop.eup %1527  ;;  %1547 = vpow2.f32 %v907_v3  ;;  %v927_v42 = vmul.f32 1.442695, %v2752_v49  ;;  %v931_v28 = vmul.f32 1.442695, %v2753_v15 }
 0x307   : > { %v2390_v27 = vpop.eup %1529  ;;  %v1026_v51 = vadd.f32 %v2287_v54, %v1025_v53  ;;  %1549 = vpow2.f32 %v911_v55  ;;  %v2754_v55 = vsub.f32 %v2714_v58, %v2101_v39  ;;  %v2759_v58 = vsub.f32 %v2719_v41, %v2101_v39 }
 0x308   : > { %v2398_v47 = vpop.eup %1531  ;;  %1551 = vpow2.f32 %v915_v7  ;;  %v2755_v7 = vsub.f32 %v2715_v24, %v2101_v39  ;;  %v2758_v24 = vsub.f32 %v2718_v4, %v2101_v39  ;;  %v2762_v41 = vsub.f32 %v2722_v25, %v2101_v39 }
 0x309   : > { %v2403_v0 = vpop.eup %1533  ;;  %v1027_v23 = vadd.f32 %v2293_v8, %v1026_v51  ;;  %1553 = vpow2.f32 %v919_v61  ;;  %v935_v35 = vmul.f32 1.442695, %v2754_v55  ;;  %v2756_v61 = vsub.f32 %v2716_v36, %v2101_v39 }
 0x30a   : > { %v2411_v49 = vpop.eup %1535  ;;  %1555 = vpow2.f32 %v923_v62  ;;  %v939_v46 = vmul.f32 1.442695, %v2755_v7  ;;  %v2757_v62 = vsub.f32 %v2717_v44, %v2101_v39  ;;  %v951_v7 = vmul.f32 1.442695, %v2758_v24 }
 0x30b   : > { %v1538_v15 = vpop.eup %1537  ;;  %v1028_v3 = vadd.f32 %v2298_v57, %v1027_v23  ;;  %1557 = vpow2.f32 %v927_v42  ;;  %v943_v51 = vmul.f32 1.442695, %v2756_v61  ;;  %v2760_v44 = vsub.f32 %v2720_v37, %v2101_v39 }
 0x30c   : > { %v1540_v55 = vpop.eup %1539  ;;  %1559 = vpow2.f32 %v931_v28  ;;  %v947_v53 = vmul.f32 1.442695, %v2757_v62  ;;  %v955_v28 = vmul.f32 1.442695, %v2759_v58  ;;  %v967_v58 = vmul.f32 1.442695, %v2762_v41 }
 0x30d   : > { %v1542_v19 = vpop.eup %1541  ;;  %v1029_v23 = vadd.f32 %v2304_v59, %v1028_v3  ;;  %1561 = vpow2.f32 %v935_v35  ;;  %v1050_v42 = vadd.f32 %v1540_v55, %v1538_v15  ;;  %v1088_v36 = vpack.c.bf16 %v1540_v55, %v1538_v15 }
 0x30e   : > { %v1544_v61 = vpop.eup %1543  ;;  %1563 = vpow2.f32 %v939_v46  ;;  %v959_v62 = vmul.f32 1.442695, %v2760_v44  ;;  %v2761_v46 = vsub.f32 %v2721_v40, %v2101_v39  ;;  %v2763_v37 = vpack.c.bf16 %v2193_v33, %v2185_v17 }
 0x30f   : > { %v1546_v57 = vpop.eup %1545  ;;  %v1030_v4 = vadd.f32 %v2309_v60, %v1029_v23  ;;  %1565 = vpow2.f32 %v943_v51  ;;  %v1051_v24 = vadd.f32 %v1542_v19, %v1050_v42  ;;  %1119 = vmatprep.subr.bf16.mxu0 %v1088_v36  ;;  %v1090_v3 = vpack.c.bf16 %v1544_v61, %v1542_v19 }
 0x310   : > { %v1548_v35 = vpop.eup %1547  ;;  %1567 = vpow2.f32 %v947_v53  ;;  %v963_v15 = vmul.f32 1.442695, %v2761_v46  ;;  %1120 = vmatpush1.bf16.msra.mxu0 %v2763_v37  ;;  %v2764_v40 = vsub.f32 %v2723_v21, %v2101_v39  ;;  %v2765_v25 = vsub.f32 %v2724_v20, %v2101_v39  ;;  %v2770_v37 = vld [vmem:[#allocation26_spill] sm:$0xff] }
 0x311   : > { %v1550_v55 = vpop.eup %1549  ;;  %v1031_v51 = vadd.f32 %v2315_v16, %v1030_v4  ;;  %1569 = vpow2.f32 %v951_v7  ;;  %v1052_v23 = vadd.f32 %v1544_v61, %v1051_v24  ;;  %1121 = vmatprep.subr.bf16.mxu0 %v1090_v3  ;;  %v1092_v19 = vpack.c.bf16 %v1548_v35, %v1546_v57 }
 0x312   : > { %v1552_v53 = vpop.eup %1551  ;;  %1571 = vpow2.f32 %v955_v28  ;;  %v971_v42 = vmul.f32 1.442695, %v2764_v40  ;;  %v975_v36 = vmul.f32 1.442695, %v2765_v25  ;;  %v2766_v61 = vsub.f32 %v2725_v9, %v2101_v39 }
 0x313   : > { %v1554_v44 = vpop.eup %1553  ;;  %v1032_v17 = vadd.f32 %v2323_v45, %v1031_v51  ;;  %1573 = vpow2.f32 %v959_v62  ;;  %v1053_v33 = vadd.f32 %v1546_v57, %v1052_v23  ;;  %v1094_v4 = vpack.c.bf16 %v1552_v53, %v1550_v55 }
 0x314   : > { %v1556_v7 = vpop.eup %1555  ;;  %1575 = vpow2.f32 %v963_v15  ;;  %v979_v28 = vmul.f32 1.442695, %v2766_v61  ;;  %v2767_v21 = vsub.f32 %v2726_v50, %v2101_v39  ;;  %v2768_v20 = vpack.c.bf16 %v2209_v32, %v2201_v2 }
 0x315   : > { %v1558_v3 = vpop.eup %1557  ;;  %v1033_v46 = vadd.f32 %v2332_v48, %v1032_v17  ;;  %1577 = vpow2.f32 %v967_v58  ;;  %v1054_v57 = vadd.f32 %v1548_v35, %v1053_v33  ;;  %v1096_v62 = vpack.c.bf16 %v1556_v7, %v1554_v44 }
 0x316   : > { %v983_v24 = vmul.f32 1.442695, %v2767_v21  ;;  %1122 = vmatpush1.bf16.msra.mxu0 %v2768_v20  ;;  %v1560_v15 = vpop.eup %1559  ;;  %1579 = vpow2.f32 %v971_v42  ;;  %v2769_v9 = vsub.f32 %v2727_v1, %v2101_v39  ;;  %v2771_v50 = vsub.f32 %v2770_v37, %v2101_v39  ;;  %v2773_v42 = vld [vmem:[#allocation28_spill] sm:$0xff] }
 0x317   : > { %1123 = vmatprep.subr.bf16.mxu0 %v1092_v19  ;;  %v1562_v23 = vpop.eup %1561  ;;  %v1034_v2 = vadd.f32 %v2343_v56, %v1033_v46  ;;  %1581 = vpow2.f32 %v975_v36  ;;  %v1055_v32 = vadd.f32 %v1550_v55, %v1054_v57  ;;  %v1098_v40 = vpack.c.bf16 %v1560_v15, %v1558_v3 }
 0x318   : > { %v987_v41 = vmul.f32 1.442695, %v2769_v9  ;;  %v991_v51 = vmul.f32 1.442695, %v2771_v50  ;;  %v1564_v58 = vpop.eup %1563  ;;  %1583 = vpow2.f32 %v979_v28  ;;  %v2772_v35 = vsub.f32 %v2729_v12, %v2101_v39 }
 0x319   : > { %v2774_v1 = vsub.f32 %v2773_v42, %v2101_v39  ;;  %v2775_v17 = vpack.c.bf16 %v2224_v29, %v2217_v52  ;;  %v1566_v33 = vpop.eup %1565  ;;  %v1035_v61 = vadd.f32 %v2352_v63, %v1034_v2  ;;  %1585 = vpow2.f32 %v983_v24 }
 0x31a   : > { %v995_v19 = vmul.f32 1.442695, %v2772_v35  ;;  %v1056_v55 = vadd.f32 %v1552_v53, %v1055_v32  ;;  %v1100_v36 = vpack.c.bf16 %v1564_v58, %v1562_v23  ;;  %v1568_v28 = vpop.eup %1567  ;;  %1587 = vpow2.f32 %v987_v41  ;;  %v2778_v53 = vld [vmem:[#allocation31_spill] sm:$0xff] }
 0x31b   : > { %v999_v25 = vmul.f32 1.442695, %v2774_v1  ;;  %1124 = vmatpush1.bf16.msra.mxu0 %v2775_v17  ;;  %v2776_v12 = vsub.f32 %v2731_v26, %v2101_v39  ;;  %v2777_v20 = vsub.f32 %v2732_v10, %v2101_v39  ;;  %v1570_v57 = vpop.eup %1569  ;;  %v1036_v29 = vadd.f32 %v2360_v43, %v1035_v61 }
 0x31c   : > { %1125 = vmatprep.subr.bf16.mxu0 %v1094_v4  ;;  %1589 = vpow2.f32 %v991_v51  ;;  %v1057_v52 = vadd.f32 %v1554_v44, %v1056_v55  ;;  %v1102_v9 = vpack.c.bf16 %v1568_v28, %v1566_v33  ;;  %v1572_v24 = vpop.eup %1571  ;;  %v2779_v4 = vsub.f32 %v2778_v53, %v2101_v39 }
 0x31d   : > { %v1003_v21 = vmul.f32 1.442695, %v2776_v12  ;;  %v1007_v46 = vmul.f32 1.442695, %v2777_v20  ;;  %1591 = vpow2.f32 %v995_v19  ;;  %v2780_v26 = vpack.c.bf16 %v2239_v5, %v2232_v13  ;;  %v1574_v37 = vpop.eup %1573 }
 0x31e   : > { %v1011_v41 = vmul.f32 1.442695, %v2779_v4  ;;  %v1037_v10 = vadd.f32 %v2367_v38, %v1036_v29  ;;  %1593 = vpow2.f32 %v999_v25  ;;  %v1058_v50 = vadd.f32 %v1556_v7, %v1057_v52  ;;  %v1576_v51 = vpop.eup %1575 }
 0x31f   : > { %1126 = vmatpush1.bf16.msra.mxu0 %v2780_v26  ;;  %v1104_v2 = vpack.c.bf16 %v1572_v24, %v1570_v57  ;;  %1595 = vpow2.f32 %v1003_v21  ;;  %v1578_v44 = vpop.eup %1577  ;;  %v1106_v39 = vpack.c.bf16 %v1576_v51, %v1574_v37  ;;  %v2781_v5 = vpack.c.bf16 %v2254_v14, %v2247_v22 }
 0x320   : > { %1127 = vmatprep.subr.bf16.mxu0 %v1096_v62  ;;  %v1038_v32 = vadd.f32 %v2375_v11, %v1037_v10  ;;  %1597 = vpow2.f32 %v1007_v46  ;;  %v1059_v35 = vadd.f32 %v1558_v3, %v1058_v50  ;;  %v1580_v19 = vpop.eup %1579  ;;  %v2782_v12 = vpack.c.bf16 %v2268_v18, %v2262_v30 }
 0x321   : > { %1599 = vpow2.f32 %v1011_v41  ;;  %v1582_v13 = vpop.eup %1581  ;;  %v1108_v62 = vpack.c.bf16 %v1580_v19, %v1578_v44  ;;  %v2784_v10 = vpack.c.bf16 %v2293_v8, %v2287_v54  ;;  %v2788_v54 = vpack.c.bf16 %v2332_v48, %v2323_v45 }
 0x322   : > { %v1039_v42 = vadd.f32 %v2382_v31, %v1038_v32  ;;  %v1060_v7 = vadd.f32 %v1560_v15, %v1059_v35  ;;  %v1584_v1 = vpop.eup %1583  ;;  %v2785_v32 = vld [vmem:[#allocation11_spill] sm:$0xff]  ;;  %v2791_v45 = vpack.c.bf16 %v2382_v31, %v2375_v11  ;;  %v2798_v31 = vld [vmem:[#allocation10_spill] sm:$0xff] }
 0x323   : > { %1128 = vmatpush1.bf16.msra.mxu0 %v2781_v5  ;;  %v1586_v25 = vpop.eup %1585  ;;  %v1110_v55 = vpack.c.bf16 %v1584_v1, %v1582_v13  ;;  %v2797_v5 = vld [vmem:[#allocation8_spill] sm:$0xff] }
 0x324   : > { %1129 = vmatprep.subr.bf16.mxu0 %v1098_v40  ;;  %v1040_v17 = vadd.f32 %v2390_v27, %v1039_v42  ;;  %v1061_v61 = vadd.f32 %v1562_v23, %v1060_v7  ;;  %v1588_v3 = vpop.eup %1587  ;;  %v2783_v23 = vpack.c.bf16 %v2281_v6, %v2274_v34  ;;  %v2786_v34 = vpack.c.bf16 %v2304_v59, %v2785_v32  ;;  %v2801_v42 = vld [vmem:[#allocation9_spill] sm:$0xff] }
 0x325   : > { %v1112_v20 = vpack.c.bf16 %v1588_v3, %v1586_v25  ;;  %v2789_v59 = vpack.c.bf16 %v2352_v63, %v2343_v56  ;;  %v2792_v56 = vpack.c.bf16 %v2398_v47, %v2390_v27  ;;  %v2799_v11 = vpack.c.bf16 %v2797_v5, %v2798_v31 }
 0x326   : > { %v1590_v21 = vpop.eup %1589  ;;  %v1041_v14 = vadd.f32 %v2398_v47, %v1040_v17  ;;  %v1062_v22 = vadd.f32 %v1564_v58, %v1061_v61  ;;  %v2803_v47 = vmov 0  }
 0x327   : > { %1130 = vmatpush1.bf16.msra.mxu0 %v2782_v12  ;;  %v1592_v15 = vpop.eup %1591 }
 0x328   : > { %1131 = vmatprep.subr.bf16.mxu0 %v1100_v36  ;;  %v1594_v40 = vpop.eup %1593  ;;  %v1042_v46 = vadd.f32 %v2403_v0, %v1041_v14  ;;  %v1063_v29 = vadd.f32 %v1566_v33, %v1062_v22  ;;  %v1114_v52 = vpack.c.bf16 %v1592_v15, %v1590_v21 }
 0x329   : > { %v1596_v53 = vpop.eup %1595 }
 0x32a   : > { %v1598_v4 = vpop.eup %1597  ;;  %v1043_v18 = vadd.f32 %v2411_v49, %v1042_v46  ;;  %v1064_v30 = vadd.f32 %v1568_v28, %v1063_v29  ;;  %v1116_v41 = vpack.c.bf16 %v1596_v53, %v1594_v40  ;;  %v2787_v28 = vpack.c.bf16 %v2315_v16, %v2309_v60 }
 0x32b   : > { %1132 = vmatpush1.bf16.msra.mxu0 %v2783_v23  ;;  %v1600_v58 = vpop.eup %1599  ;;  %v2790_v60 = vpack.c.bf16 %v2367_v38, %v2360_v43  ;;  %v2793_v43 = vpack.c.bf16 %v2411_v49, %v2403_v0  ;;  %v2794_v38 = vld [vmem:[#allocation5_spill] sm:$0xff] }
 0x32c   : > { %1133 = vmatprep.subr.bf16.mxu0 %v1102_v9  ;;  %v1065_v36 = vadd.f32 %v1570_v57, %v1064_v30  ;;  %v1118_v26 = vpack.c.bf16 %v1600_v58, %v1598_v4  ;;  %v1044_v27 = vrot.slane %v1043_v18, 4 }
 0x32e   : > { %v1066_v33 = vadd.f32 %v1572_v24, %v1065_v36 }
 0x32f   : > { %1134 = vmatpush1.bf16.msra.mxu0 %v2784_v10 }
 0x330   : > { %1135 = vmatprep.subr.bf16.mxu0 %v1104_v2  ;;  %v1067_v50 = vadd.f32 %v1574_v37, %v1066_v33 }
 0x332   : > { %v1068_v6 = vadd.f32 %v1576_v51, %v1067_v50 }
 0x333   : > { %1136 = vmatpush1.bf16.msra.mxu0 %v2786_v34 }
 0x334   : > { %1137 = vmatprep.subr.bf16.mxu0 %v1106_v39  ;;  %v1069_v35 = vadd.f32 %v1578_v44, %v1068_v6  ;;  %v2795_v39 = vld [vmem:[#allocation6_spill] sm:$0xff]  ;;  %v1471_v6 = vld [vmem:[%s2631_s3] sm:$0xff]  }
 0x336   : > { %v1070_v57 = vadd.f32 %v1580_v19, %v1069_v35  ;;  %v2796_v19 = vpack.c.bf16 %v2794_v38, %v2795_v39  ;;  %v1472_v35 = vld [vmem:[%s2631_s3 + $0x8] sm:$0xff]  }
 0x337   : > { %1138 = vmatpush1.bf16.msra.mxu0 %v2787_v28  ;;  %v1197_v28 = vpop.permute.xlu0 %1196 }
 0x338   : > { %1139 = vmatprep.subr.bf16.mxu0 %v1108_v62  ;;  %v1071_v9 = vadd.f32 %v1582_v13, %v1070_v57  ;;  %v2800_v13 = vld [vmem:[#allocation7_spill] sm:$0xff] }
 0x339   : > { %v2802_v7 = vpack.c.bf16 %v2800_v13, %v2801_v42  ;;  %v1609_v42 = vld [vmem:[%s1774_s13 + $0x20] sm:$0xff] }
 0x33a   : > { %v1072_v8 = vadd.f32 %v1584_v1, %v1071_v9  ;;  %v1045_v1 = vadd.f32 %v1044_v27, %v1043_v18 }
 0x33b   : > { %1140 = vmatpush1.bf16.msra.mxu0 %v2788_v54  ;;  %v1207_v38 = vpop.permute.xlu0 %1206 }
 0x33c   : > { %1141 = vmatprep.subr.bf16.mxu0 %v1110_v55  ;;  %v1073_v24 = vadd.f32 %v1586_v25, %v1072_v8  ;;  %v1046_v0 = vrot.slane %v1045_v1, 2  ;;  %v1202_v8 = vpop.permute.xlu1 %1201 }
 0x33e   : > { %v1074_v37 = vadd.f32 %v1588_v3, %v1073_v24  ;;  %v1047_v17 = vadd.f32 %v1046_v0, %v1045_v1  ;;  %v1611_v0 = vld [vmem:[%s1774_s13 + $0x30] sm:$0xff] }
 0x33f   : > { %1142 = vmatpush1.bf16.msra.mxu0 %v2789_v59 }
 0x340   : > { %1143 = vmatprep.subr.bf16.mxu0 %v1112_v20  ;;  %v1075_v2 = vadd.f32 %v1590_v21, %v1074_v37  ;;  %v1048_v55 = vrot.slane %v1047_v17, 1  ;;  %v1605_v37 = vld [vmem:[%s1774_s13] sm:$0xff]  ;;  %v1212_v31 = vpop.permute.xlu1 %1211 }
 0x342   : > { %v1076_v16 = vadd.f32 %v1592_v15, %v1075_v2  ;;  %v1049_v12 = vadd.f32 %v1048_v55, %v1047_v17  ;;  %v1612_v17 = vld [vmem:[%s1774_s13 + $0x38] sm:$0xff] }
 0x343   : > { %1144 = vmatpush1.bf16.msra.mxu0 %v2790_v60 }
 0x344   : > { %1145 = vmatprep.subr.bf16.mxu0 %v1114_v52  ;;  %v1077_v51 = vadd.f32 %v1594_v40, %v1076_v16  ;;  %1601 = vrcp.f32 %v1049_v12 }
 0x346   : > { %v1078_v48 = vadd.f32 %v1596_v53, %v1077_v51  ;;  %v1606_v51 = vld [vmem:[%s1774_s13 + $0x8] sm:$0xff] }
 0x347   : > { %1146 = vmatpush1.bf16.msra.mxu0 %v2791_v45 }
 0x348   : > { %1147 = vmatprep.subr.bf16.mxu0 %v1116_v41  ;;  %v1079_v44 = vadd.f32 %v1598_v4, %v1078_v48 }
 0x34a   : > { %v1080_v63 = vadd.f32 %v1600_v58, %v1079_v44  ;;  %v1607_v44 = vld [vmem:[%s1774_s13 + $0x10] sm:$0xff] }
 0x34b   : > { %1148 = vmatpush1.bf16.msra.mxu0 %v2792_v56 }
 0x34c   : > { %1149 = vmatprep.subr.bf16.mxu0 %v1118_v26  ;;  %v1081_v62 = vrot.slane %v1080_v63, 4 }
 0x34e   : > { %v1082_v25 = vadd.f32 %v1081_v62, %v1080_v63  ;;  %v1602_v14 = vpop.eup %1601  ;;  %v1608_v63 = vld [vmem:[%s1774_s13 + $0x18] sm:$0xff]  ;;  %v1610_v62 = vld [vmem:[%s1774_s13 + $0x28] sm:$0xff] }
 0x34f   : > { %1150 = vmatpush1.bf16.msra.mxu0 %v2793_v43 }
 0x350   : > { %v1083_v49 = vrot.slane %v1082_v25, 2 }
 0x352   : > { %1152 = vmatmul.mubr.bf16.vlgmr.msra.gmra.mrb[24].mxu0 %v2796_v19  ;;  %v1084_v61 = vadd.f32 %v1083_v49, %v1082_v25 }
 0x353   : > { %1161 = vmatprep.mubr.bf16.mxu0 %v2799_v11 }
 0x354   : > { %v1085_v3 = vrot.slane %v1084_v61, 1 }
 0x356   : > { %v1086_v21 = vadd.f32 %v1085_v3, %v1084_v61 }
 0x358   : > { %1603 = vrcp.f32 %v1086_v21 }
 0x35a   : > { %1162 = vmatmul.mubr.bf16.gmra.mrb[28].mxu0 %v2802_v7 }
 0x35b   : > { %1262 = vmatprep.mubr.bf16.mxu0 %v2803_v47 }
 0x362   : > { %v1604_v20 = vpop.eup %1603 }
 0x425   : > { %v1153_v22 = vpop.f32.mrb[24].mxu0 }
 0x426   : > { %v1174_v15 = vmul.f32 %v1602_v14, %v1153_v22  ;;  %v1155_v40 = vpop.f32.mrb[25].mxu0 }
 0x427   : > { %v1175_v46 = vmul.f32 %v1604_v20, %v1155_v40  ;;  %v1157_v29 = vpop.f32.mrb[26].mxu0 }
 0x428   : > { %v1176_v52 = vmul.f32 %v1602_v14, %v1157_v29  ;;  %v1159_v53 = vpop.f32.mrb[27].mxu0 }
 0x429   : > { %v1177_v23 = vmul.f32 %v1604_v20, %v1159_v53 }
 0x42a   : > { %v1186_v4 = vpack.c.bf16 %v1176_v52, %v1174_v15 }
 0x42b   : > { %v1187_v18 = vpack.c.bf16 %v1177_v23, %v1175_v46 }
 0x42d   : > { %v1163_v30 = vpop.f32.mrb[28].mxu0  ;;  %1230 = vmatprep.subr.bf16.mxu0 %v1187_v18 }
 0x42e   : > { %v1178_v41 = vmul.f32 %v1602_v14, %v1163_v30  ;;  %v1165_v58 = vpop.f32.mrb[29].mxu0  ;;  %1231 = vmatpush1.bf16.msra.mxu0 %v1186_v4 }
 0x42f   : > { %v1179_v36 = vmul.f32 %v1604_v20, %v1165_v58  ;;  %v1167_v26 = vpop.f32.mrb[30].mxu0 }
 0x430   : > { %v1180_v10 = vmul.f32 %v1602_v14, %v1167_v26  ;;  %v1169_v33 = vpop.f32.mrb[31].mxu0 }
 0x431   : > { %v1181_v50 = vmul.f32 %v1604_v20, %v1169_v33 }
 0x432   : > { %v1188_v32 = vpack.c.bf16 %v1180_v10, %v1178_v41 }
 0x433   : > { %v1189_v34 = vpack.c.bf16 %v1181_v50, %v1179_v36 }
 0x435   : > { %1232 = vmatprep.subr.bf16.mxu0 %v1189_v34 }
 0x436   : > { %1233 = vmatpush1.bf16.msra.mxu0 %v1188_v32 }
 0x439   : > { %1412 = vmatmul.mubr.msk.bf16.vlgmr.msra.gmra.mrb[32].mxu0 %vm350_vm0, %v1471_v6 }
 0x43a   : > { %1272 = vmatprep.mubr.bf16.mxu0 %v2803_v47 }
 0x441   : > { %1413 = vmatmul.mubr.msk.bf16.gmra.mrb[36].mxu0 %vm350_vm0, %v1472_v35 }
 0x50c   : > { %v1264_v57 = vpop.f32.mrb[32].mxu0 }
 0x50d   : > { %v1265_v9 = vadd.f32 %v1264_v57, %v1197_v28  ;;  %v1266_v54 = vpop.f32.mrb[33].mxu0 }
 0x50e   : > { %v1267_v24 = vadd.f32 %v1266_v54, %v1197_v28  ;;  %v1268_v59 = vpop.f32.mrb[34].mxu0 }
 0x50f   : > { %v1283_v2 = vadd.f32 %v1605_v37, %v1265_v9  ;;  %v1269_v60 = vadd.f32 %v1268_v59, %v1202_v8  ;;  %v1270_v16 = vpop.f32.mrb[35].mxu0 }
 0x510   : > { %v1284_v45 = vadd.f32 %v1606_v51, %v1267_v24  ;;  %v1271_v48 = vadd.f32 %v1270_v16, %v1202_v8 }
 0x511   : > { %1291 = vst [vmem:[%s2560_s15] sm:$0xff] %v1283_v2  ;;  %v1285_v56 = vadd.f32 %v1607_v44, %v1269_v60 }
 0x512   : > { %1292 = vst [vmem:[%s2560_s15 + $0x8] sm:$0xff] %v1284_v45  ;;  %v1286_v43 = vadd.f32 %v1608_v63, %v1271_v48 }
 0x513   : > { %1293 = vst [vmem:[%s2560_s15 + $0x10] sm:$0xff] %v1285_v56 }
 0x514   : > { %1294 = vst [vmem:[%s2560_s15 + $0x18] sm:$0xff] %v1286_v43  ;;  %v1274_v39 = vpop.f32.mrb[36].mxu0 }
 0x515   : > { %v1275_v19 = vadd.f32 %v1274_v39, %v1207_v38  ;;  %v1276_v5 = vpop.f32.mrb[37].mxu0 }
 0x516   : > { %v1277_v11 = vadd.f32 %v1276_v5, %v1207_v38  ;;  %v1278_v13 = vpop.f32.mrb[38].mxu0 }
 0x517   : > { %v1287_v7 = vadd.f32 %v1609_v42, %v1275_v19  ;;  %v1279_v47 = vadd.f32 %v1278_v13, %v1212_v31  ;;  %v1280_v27 = vpop.f32.mrb[39].mxu0 }
 0x518   : > { %v1288_v1 = vadd.f32 %v1610_v62, %v1277_v11  ;;  %v1281_v25 = vadd.f32 %v1280_v27, %v1212_v31 }
 0x519   : > { %1295 = vst [vmem:[%s2560_s15 + $0x20] sm:$0xff] %v1287_v7  ;;  %v1289_v49 = vadd.f32 %v1611_v0, %v1279_v47 }
 0x51a   : > { %1296 = vst [vmem:[%s2560_s15 + $0x28] sm:$0xff] %v1288_v1  ;;  %v1290_v61 = vadd.f32 %v1612_v17, %v1281_v25 }
 0x51b   : > { %1297 = vst [vmem:[%s2560_s15 + $0x30] sm:$0xff] %v1289_v49 }
 0x51c   : > { %1298 = vst [vmem:[%s2560_s15 + $0x38] sm:$0xff] %v1290_v61 }
 0x51d   : > { %1626 = shalt.err (!%p1623_p3)
}
 0x51e   : > { %s1627_s13 = scalar_lea.hbm %s2577_s26, 1024  ;;  %s1631_s11 = scalar_lea.hbm %s2633_s5, 2048 }
 0x51f   : > { %p1628_p4 = scmp.ne.s32.totalorder %s2577_s26, %s1627_s13  ;;  %p1632_p9 = scmp.lt.u32.totalorder %s2577_s26, %s2633_s5 }
 0x520   : > { %p1633_p10 = scmp.lt.u32.totalorder %s1631_s11, %s1627_s13  ;;  %p1635_p12 = scmp.lt.u32.totalorder %s1627_s13, %s2577_s26 }
 0x521   : > { %p1629_p7 = pnand %p1628_p4, %p1749_p5 }
 0x522   : > { %p1634_p11 = por %p1633_p10, %p1632_p9 }
 0x523   : > { %p1630_p8 = pneg %p1629_p7 }
 0x524   : > { %p1636_p13 = por %p1635_p12, %p1634_p11 }
 0x526   : > { %p1637_p0 = pnand %p1636_p13, %p1630_p8 }
 0x528   : > { %1640 = shalt.err (!%p1637_p0)
}
 0x529   : > { %s1679_s15 = smov 256   ;;  %s1680_s16 = smov 16  }
 0x52a   : > { %1421 = dma.vmem_to_hbm [thread:$0]  (%p1749_p5), %s2579_s17, 1024, %s2577_s26, %s2587_s22, %s1679_s15, %s1679_s15, %s1680_s16  }
 0x52b PF: > { %p1427_p1 = scmp.ge.s32.totalorder %s1675_s21, 2  ;;  %s1328_s23 = sand.u32 1, %s1663_s18  }
 0x52c   : > { %s1329_s25 = scalar_lea.sflag [#allocation3], %s1328_s23 }
 0x52d   : > { %p1424_p2 = pnand %p1427_p1, %p1753_p6 }
 0x52f   : > { %1658 = dma.done.wait (!%p1424_p2), %s1329_s25, 1024  }
 0x530   : > { %1660 = vsyncadd (!%p1424_p2), %s1329_s25, 4294966272  ;;  %p15_p3 = scmp.ge.s32.totalorder %s1736_s24, 4   ;;  %s2804_s18 = smov %s1667_s19 }
 0x531   : > { %s2805_s19 = smov %s1671_s20  ;;  %s2806_s20 = smov %s1747_s27 }
 0x532   : > { %s2807_s21 = smov %s1736_s24  ;;  %17 = sbr.rel (!%p15_p3) target bundleno = 3 (0x3), region = 75 }
 0x539   :  { %1334 = vsyncpa [#allocation3], 1 }
 0x53a   :  { %1336 = vsyncpa [#allocation3 + $0x1], 1 }

</bundles_post_ra>
